<compile_context>
chip_gen: v7x
topology: tpu7x:2x2x1
jax: 0.10.0
libtpu: 0.0.40
codegen_flags: <defaults>
</compile_context>

<pallas_src>
import functools
import math

import jax
import jax.numpy as jnp
from jax import lax
from jax.experimental import pallas as pl
from jax.experimental.pallas import tpu as pltpu


def _sigmoid(x):
    # Stable sigmoid via tanh (exact identity); kernel and reference share it.
    return 0.5 * (jnp.tanh(0.5 * x) + 1.0)


def lstm_wavefront_kernel(x_ref, wih0_ref, wcomb_ref, bcomb_ref, o_ref,
                          xg_scr, hstate_ref, *,
                          seq_len, batch, hidden, num_layers):
    """Whole multi-layer LSTM, wavefront-fused, in one kernel invocation.

    x_ref      : (T*Bp, E)      bf16, time-major flattened layer-0 input
    wih0_ref   : (E, 4H)        bf16, layer-0 input weights (pre-transposed)
    wcomb_ref  : (L*H, L*4H)    bf16, block-bidiagonal [w_hh_l ; w_ih_{l+1}]
    bcomb_ref  : (1, L*4H)      f32,  per-layer summed biases, concatenated
    o_ref      : (Bp, T*H)      out,  lane-dense batch-major output
    xg_scr     : (T*Bp, 4H)     f32 scratch, layer-0 input projection
    hstate_ref : (Bp, L*H)      f32 scratch, packed per-layer hidden state
    """
    H, Bp, T, L = hidden, batch, seq_len, num_layers

    # Layer-0 input projection for every (t, b) row: one wide MXU matmul.
    xg_scr[...] = jnp.dot(x_ref[...], wih0_ref[...],
                          preferred_element_type=jnp.float32)

    # Zero initial hidden state for every layer (packed along lanes).
    hstate_ref[...] = jnp.zeros_like(hstate_ref)

    wcomb = wcomb_ref[...]                      # (L*H, L*4H) bf16
    bcomb = bcomb_ref[...]                      # (1, L*4H)   f32

    # Lane mask / scale selecting the candidate (g) gate inside a 4H block.
    lane = lax.broadcasted_iota(jnp.int32, (Bp, 4 * H), 1)
    g_mask = (lane >= 2 * H) & (lane < 3 * H)
    g_scale = jnp.where(g_mask, jnp.float32(1.0), jnp.float32(0.5))

    c_state = [jnp.zeros((Bp, H), jnp.float32) for _ in range(L)]

    # Wavefront schedule: at step s, layer l processes timestep t = s - l.
    # T and L are small static constants, so the loop is fully unrolled and
    # every index / boundary condition is static.
    for s in range(T + L - 1):
        # Start-of-step snapshot of every layer's hidden state.
        x_cat = hstate_ref[...].astype(wcomb.dtype)              # (Bp, L*H)
        # One combined recurrent + inter-layer matmul for all active layers.
        g_all = jnp.dot(x_cat, wcomb,
                        preferred_element_type=jnp.float32) + bcomb  # (Bp, L*4H)

        for l in range(L):
            t = s - l
            if t < 0 or t >= T:
                continue                                   # layer idle (static)

            gl = g_all[:, l * 4 * H:(l + 1) * 4 * H]       # (Bp, 4H)
            if l == 0:
                gl = gl + xg_scr[t * Bp:(t + 1) * Bp, :]   # precomputed x-proj

            # Full-width activation: single tanh EUP pass for all 4 gates.
            th = jnp.tanh(gl * g_scale)
            act = jnp.where(g_mask, th, 0.5 * th + 0.5)

            i_g = act[:, 0 * H:1 * H]
            f_g = act[:, 1 * H:2 * H]
            g_g = act[:, 2 * H:3 * H]
            o_g = act[:, 3 * H:4 * H]

            c_new = f_g * c_state[l] + i_g * g_g
            h_new = o_g * jnp.tanh(c_new)
            c_state[l] = c_new

            # Persist hidden state for the next wavefront step.
            hstate_ref[:, l * H:(l + 1) * H] = h_new
            if l == L - 1:
                # Lane-dense staging: batch-major, time along lanes.
                o_ref[:, t * H:(t + 1) * H] = h_new.astype(o_ref.dtype)


def lstm_forward(x, layer_params):
    """Equivalent of LSTM.forward(x): zero (h0, c0), returns the last layer's
    hidden state sequence, shape (B, T, H)."""
    B, T, E = x.shape
    L = len(layer_params)
    H = layer_params[0][1].shape[1]              # w_hh: (4H, H)
    Bp = ((B + 7) // 8) * 8                      # pad batch to full sublanes

    # Pad batch, go time-major, flatten rows (row t*Bp + b <-> (t, b)), bf16.
    x_p = jnp.pad(x, ((0, Bp - B), (0, 0), (0, 0)))
    x_flat = jnp.transpose(x_p, (1, 0, 2)).reshape(T * Bp, E).astype(jnp.bfloat16)

    # Layer-0 input weights, pre-transposed, bf16.
    wih0_t = jnp.transpose(layer_params[0][0]).astype(jnp.bfloat16)   # (E, 4H)

    # Combined wavefront weight: block (r, c) = w_hh_r^T if c == r,
    #                                           w_ih_c^T if c == r + 1, else 0.
    wcomb = jnp.zeros((L * H, L * 4 * H), jnp.float32)
    for l, (w_ih, w_hh, b_ih, b_hh) in enumerate(layer_params):
        wcomb = wcomb.at[l * H:(l + 1) * H,
                         l * 4 * H:(l + 1) * 4 * H].set(jnp.transpose(w_hh))
        if l + 1 < L:
            w_ih_next = layer_params[l + 1][0]           # (4H, H)
            wcomb = wcomb.at[l * H:(l + 1) * H,
                             (l + 1) * 4 * H:(l + 2) * 4 * H].set(
                                 jnp.transpose(w_ih_next))
    wcomb = wcomb.astype(jnp.bfloat16)

    # Per-layer summed biases, concatenated along lanes, kept in f32.
    bcomb = jnp.concatenate(
        [(b_ih + b_hh) for (_, _, b_ih, b_hh) in layer_params]
    ).reshape(1, L * 4 * H).astype(jnp.float32)

    kernel = functools.partial(lstm_wavefront_kernel,
                               seq_len=T, batch=Bp, hidden=H, num_layers=L)

    out = pl.pallas_call(
        kernel,
        out_shape=jax.ShapeDtypeStruct((Bp, T * H), x.dtype),
        in_specs=[pl.BlockSpec(memory_space=pltpu.MemorySpace.VMEM)
                  for _ in range(4)],
        out_specs=pl.BlockSpec(memory_space=pltpu.MemorySpace.VMEM),
        scratch_shapes=[pltpu.VMEM((T * Bp, 4 * H), jnp.float32),
                        pltpu.VMEM((Bp, L * H), jnp.float32)],
    )(x_flat, wih0_t, wcomb, bcomb)

    # (Bp, T*H) -> (B, T, H); already batch-major, no transpose needed.
    return out.reshape(Bp, T, H)[:B]


def lstm_ref(x, layer_params, cast_dtype=None):
    """Pure-JAX reference (eval-mode nn.LSTM).  If cast_dtype is set, matmul
    inputs (x_t, h, weights) are rounded to that dtype with f32 accumulation,
    mirroring the kernel's bf16 MXU path."""
    B, T, _ = x.shape
    seq = x
    for (w_ih, w_hh, b_ih, b_hh) in layer_params:
        H = w_hh.shape[1]
        wi, wh = jnp.transpose(w_ih), jnp.transpose(w_hh)
        if cast_dtype is not None:
            wi, wh = wi.astype(cast_dtype), wh.astype(cast_dtype)
        h = jnp.zeros((B, H), jnp.float32)
        c = jnp.zeros((B, H), jnp.float32)
        outs = []
        for t in range(T):
            xt, hh = seq[:, t, :], h
            if cast_dtype is not None:
                xt, hh = xt.astype(cast_dtype), hh.astype(cast_dtype)
            gates = (jnp.dot(xt, wi, preferred_element_type=jnp.float32) + b_ih
                     + jnp.dot(hh, wh, preferred_element_type=jnp.float32) + b_hh)
            i_g = _sigmoid(gates[:, 0 * H:1 * H])
            f_g = _sigmoid(gates[:, 1 * H:2 * H])
            g_g = jnp.tanh(gates[:, 2 * H:3 * H])
            o_g = _sigmoid(gates[:, 3 * H:4 * H])
            c = f_g * c + i_g * g_g
            h = o_g * jnp.tanh(c)
            outs.append(h)
        seq = jnp.stack(outs, axis=1)
    return seq


if __name__ == "__main__":
    B, T = 2, 8                           # batch, seq_len
    INPUT_SIZE, HIDDEN, LAYERS = 32, 32, 2

    key = jax.random.PRNGKey(0)
    key, kx = jax.random.split(key)
    x = jax.random.normal(kx, (B, T, INPUT_SIZE), dtype=jnp.float32)

    # PyTorch nn.LSTM default init: U(-1/sqrt(H), 1/sqrt(H)) for all params.
    limit = 1.0 / math.sqrt(HIDDEN)
    layer_params = []
    for layer in range(LAYERS):
        d_in = INPUT_SIZE if layer == 0 else HIDDEN
        key, k1, k2, k3, k4 = jax.random.split(key, 5)
        w_ih = jax.random.uniform(k1, (4 * HIDDEN, d_in), minval=-limit,
                                  maxval=limit, dtype=jnp.float32)
        w_hh = jax.random.uniform(k2, (4 * HIDDEN, HIDDEN), minval=-limit,
                                  maxval=limit, dtype=jnp.float32)
        b_ih = jax.random.uniform(k3, (4 * HIDDEN,), minval=-limit,
                                  maxval=limit, dtype=jnp.float32)
        b_hh = jax.random.uniform(k4, (4 * HIDDEN,), minval=-limit,
                                  maxval=limit, dtype=jnp.float32)
        layer_params.append((w_ih, w_hh, b_ih, b_hh))

    out = lstm_forward(x, layer_params)
    out = jax.block_until_ready(out)
    assert out.shape == (B, T, HIDDEN)

    # Tight check: same bf16-rounded weights/activations as the kernel's MXU
    # path (only accumulation-order / MXU-vs-XLA differences remain).
    ref_bf16 = lstm_ref(x, layer_params, cast_dtype=jnp.bfloat16)
    err_tight = float(jnp.max(jnp.abs(out - ref_bf16)))
    assert jnp.allclose(out, ref_bf16, atol=2e-3, rtol=2e-3), err_tight

    # Spec check: full-f32 nn.LSTM reference; tolerance covers the deliberate
    # bf16 weight/activation rounding on the MXU path.
    ref_f32 = lstm_ref(x, layer_params)
    err_spec = float(jnp.max(jnp.abs(out - ref_f32)))
    assert jnp.allclose(out, ref_f32, atol=5e-2, rtol=5e-2), err_spec

    print("KERNEL_OK")
</pallas_src>

<mosaic_0001>
module attributes {stable_mosaic.version = 11 : i64} {
  func.func @lstm_wavefront_kernel(%arg0: memref<64x32xbf16, #tpu.memory_space<vmem>>, %arg1: memref<32x128xbf16, #tpu.memory_space<vmem>>, %arg2: memref<64x256xbf16, #tpu.memory_space<vmem>>, %arg3: memref<1x256xf32, #tpu.memory_space<vmem>>, %arg4: memref<8x256xf32, #tpu.memory_space<vmem>>, %arg5: memref<64x128xf32, #tpu.memory_space<vmem>>, %arg6: memref<8x64xf32, #tpu.memory_space<vmem>>) attributes {dimension_semantics = [], scalar_prefetch = 0 : i64, scratch_operands = 2 : i64, tpu.core_type = #tpu.core_type<tc>} {
    %c0 = arith.constant 0 : index
    %c0_0 = arith.constant 0 : index
    %0 = vector.load %arg0[%c0, %c0_0] : memref<64x32xbf16, #tpu.memory_space<vmem>>, vector<64x32xbf16>
    %c0_1 = arith.constant 0 : index
    %c0_2 = arith.constant 0 : index
    %1 = vector.load %arg1[%c0_1, %c0_2] : memref<32x128xbf16, #tpu.memory_space<vmem>>, vector<32x128xbf16>
    %cst = arith.constant dense<0.000000e+00> : vector<64x128xf32>
    %2 = tpu.matmul %0, %1, %cst {dimension_numbers = #tpu.dot_dimension_numbers<[1], [0], [0], [1], [0, 0, 1, 1], [], []>} : vector<64x32xbf16>, vector<32x128xbf16>, vector<64x128xf32> -> vector<64x128xf32>
    %c0_3 = arith.constant 0 : index
    %c0_4 = arith.constant 0 : index
    %3 = vector.load %arg5[%c0_3, %c0_4] : memref<64x128xf32, #tpu.memory_space<vmem>>, vector<64x128xf32>
    tpu.vector_store %arg5[%c0_3, %c0_4], %2 {strides = array<i32>} : memref<64x128xf32, #tpu.memory_space<vmem>>, vector<64x128xf32>,
    %cst_5 = arith.constant 0.000000e+00 : f32
    %4 = vector.broadcast %cst_5 : f32 to vector<8x64xf32>
    %c0_6 = arith.constant 0 : index
    %c0_7 = arith.constant 0 : index
    %5 = vector.load %arg6[%c0_6, %c0_7] : memref<8x64xf32, #tpu.memory_space<vmem>>, vector<8x64xf32>
    tpu.vector_store %arg6[%c0_6, %c0_7], %4 {strides = array<i32>} : memref<8x64xf32, #tpu.memory_space<vmem>>, vector<8x64xf32>,
    %c0_8 = arith.constant 0 : index
    %c0_9 = arith.constant 0 : index
    %6 = vector.load %arg2[%c0_8, %c0_9] : memref<64x256xbf16, #tpu.memory_space<vmem>>, vector<64x256xbf16>
    %c0_10 = arith.constant 0 : index
    %c0_11 = arith.constant 0 : index
    %7 = vector.load %arg3[%c0_10, %c0_11] : memref<1x256xf32, #tpu.memory_space<vmem>>, vector<1x256xf32>
    %8 = tpu.iota {dimensions = array<i32: 1>} : vector<8x128xi32>
    %c64_i32 = arith.constant 64 : i32
    %9 = vector.broadcast %c64_i32 : i32 to vector<8x128xi32>
    %10 = arith.cmpi sge, %8, %9 : vector<8x128xi32>
    %c96_i32 = arith.constant 96 : i32
    %11 = vector.broadcast %c96_i32 : i32 to vector<8x128xi32>
    %12 = arith.cmpi slt, %8, %11 : vector<8x128xi32>
    %13 = arith.andi %10, %12 : vector<8x128xi1>
    %cst_12 = arith.constant 1.000000e+00 : f32
    %cst_13 = arith.constant 5.000000e-01 : f32
    %14 = vector.broadcast %cst_12 : f32 to vector<8x128xf32>
    %15 = vector.broadcast %cst_13 : f32 to vector<8x128xf32>
    %16 = arith.select %13, %14, %15 : vector<8x128xi1>, vector<8x128xf32>
    %cst_14 = arith.constant 0.000000e+00 : f32
    %17 = vector.broadcast %cst_14 : f32 to vector<8x32xf32>
    %cst_15 = arith.constant 0.000000e+00 : f32
    %18 = vector.broadcast %cst_15 : f32 to vector<8x32xf32>
    %c0_16 = arith.constant 0 : index
    %c0_17 = arith.constant 0 : index
    %19 = vector.load %arg6[%c0_16, %c0_17] : memref<8x64xf32, #tpu.memory_space<vmem>>, vector<8x64xf32>
    %20 = arith.truncf %19 : vector<8x64xf32> to vector<8x64xbf16>
    %cst_18 = arith.constant dense<0.000000e+00> : vector<8x256xf32>
    %21 = tpu.matmul %20, %6, %cst_18 {dimension_numbers = #tpu.dot_dimension_numbers<[1], [0], [0], [1], [0, 0, 1, 1], [], []>} : vector<8x64xbf16>, vector<64x256xbf16>, vector<8x256xf32> -> vector<8x256xf32>
    %22 = vector.broadcast %7 : vector<1x256xf32> to vector<8x256xf32>
    %23 = arith.addf %21, %22 : vector<8x256xf32>
    %24 = vector.extract_strided_slice %23 {offsets = [0, 0], sizes = [8, 128], strides = [1, 1]} : vector<8x256xf32> to vector<8x128xf32>
    %c0_19 = arith.constant 0 : index
    %c0_20 = arith.constant 0 : index
    %25 = vector.load %arg5[%c0_19, %c0_20] : memref<64x128xf32, #tpu.memory_space<vmem>>, vector<8x128xf32>
    %26 = arith.addf %24, %25 : vector<8x128xf32>
    %27 = arith.mulf %26, %16 : vector<8x128xf32>
    %28 = math.tanh %27 : vector<8x128xf32>
    %cst_21 = arith.constant 5.000000e-01 : f32
    %29 = vector.broadcast %cst_21 : f32 to vector<8x128xf32>
    %30 = arith.mulf %29, %28 : vector<8x128xf32>
    %cst_22 = arith.constant 5.000000e-01 : f32
    %31 = vector.broadcast %cst_22 : f32 to vector<8x128xf32>
    %32 = arith.addf %30, %31 : vector<8x128xf32>
    %33 = arith.select %13, %28, %32 : vector<8x128xi1>, vector<8x128xf32>
    %34 = vector.extract_strided_slice %33 {offsets = [0, 0], sizes = [8, 32], strides = [1, 1]} : vector<8x128xf32> to vector<8x32xf32>
    %35 = vector.extract_strided_slice %33 {offsets = [0, 32], sizes = [8, 32], strides = [1, 1]} : vector<8x128xf32> to vector<8x32xf32>
    %36 = vector.extract_strided_slice %33 {offsets = [0, 64], sizes = [8, 32], strides = [1, 1]} : vector<8x128xf32> to vector<8x32xf32>
    %37 = vector.extract_strided_slice %33 {offsets = [0, 96], sizes = [8, 32], strides = [1, 1]} : vector<8x128xf32> to vector<8x32xf32>
    %38 = arith.mulf %35, %17 : vector<8x32xf32>
    %39 = arith.mulf %34, %36 : vector<8x32xf32>
    %40 = arith.addf %38, %39 : vector<8x32xf32>
    %41 = math.tanh %40 : vector<8x32xf32>
    %42 = arith.mulf %37, %41 : vector<8x32xf32>
    %c0_23 = arith.constant 0 : index
    %c0_24 = arith.constant 0 : index
    %43 = vector.load %arg6[%c0_23, %c0_24] : memref<8x64xf32, #tpu.memory_space<vmem>>, vector<8x32xf32>
    tpu.vector_store %arg6[%c0_23, %c0_24], %42 {strides = array<i32>} : memref<8x64xf32, #tpu.memory_space<vmem>>, vector<8x32xf32>,
    %c0_25 = arith.constant 0 : index
    %c0_26 = arith.constant 0 : index
    %44 = vector.load %arg6[%c0_25, %c0_26] : memref<8x64xf32, #tpu.memory_space<vmem>>, vector<8x64xf32>
    %45 = arith.truncf %44 : vector<8x64xf32> to vector<8x64xbf16>
    %cst_27 = arith.constant dense<0.000000e+00> : vector<8x256xf32>
    %46 = tpu.matmul %45, %6, %cst_27 {dimension_numbers = #tpu.dot_dimension_numbers<[1], [0], [0], [1], [0, 0, 1, 1], [], []>} : vector<8x64xbf16>, vector<64x256xbf16>, vector<8x256xf32> -> vector<8x256xf32>
    %47 = vector.broadcast %7 : vector<1x256xf32> to vector<8x256xf32>
    %48 = arith.addf %46, %47 : vector<8x256xf32>
    %49 = vector.extract_strided_slice %48 {offsets = [0, 0], sizes = [8, 128], strides = [1, 1]} : vector<8x256xf32> to vector<8x128xf32>
    %c8 = arith.constant 8 : index
    %c0_28 = arith.constant 0 : index
    %50 = vector.load %arg5[%c8, %c0_28] : memref<64x128xf32, #tpu.memory_space<vmem>>, vector<8x128xf32>
    %51 = arith.addf %49, %50 : vector<8x128xf32>
    %52 = arith.mulf %51, %16 : vector<8x128xf32>
    %53 = math.tanh %52 : vector<8x128xf32>
    %cst_29 = arith.constant 5.000000e-01 : f32
    %54 = vector.broadcast %cst_29 : f32 to vector<8x128xf32>
    %55 = arith.mulf %54, %53 : vector<8x128xf32>
    %cst_30 = arith.constant 5.000000e-01 : f32
    %56 = vector.broadcast %cst_30 : f32 to vector<8x128xf32>
    %57 = arith.addf %55, %56 : vector<8x128xf32>
    %58 = arith.select %13, %53, %57 : vector<8x128xi1>, vector<8x128xf32>
    %59 = vector.extract_strided_slice %58 {offsets = [0, 0], sizes = [8, 32], strides = [1, 1]} : vector<8x128xf32> to vector<8x32xf32>
    %60 = vector.extract_strided_slice %58 {offsets = [0, 32], sizes = [8, 32], strides = [1, 1]} : vector<8x128xf32> to vector<8x32xf32>
    %61 = vector.extract_strided_slice %58 {offsets = [0, 64], sizes = [8, 32], strides = [1, 1]} : vector<8x128xf32> to vector<8x32xf32>
    %62 = vector.extract_strided_slice %58 {offsets = [0, 96], sizes = [8, 32], strides = [1, 1]} : vector<8x128xf32> to vector<8x32xf32>
    %63 = arith.mulf %60, %40 : vector<8x32xf32>
    %64 = arith.mulf %59, %61 : vector<8x32xf32>
    %65 = arith.addf %63, %64 : vector<8x32xf32>
    %66 = math.tanh %65 : vector<8x32xf32>
    %67 = arith.mulf %62, %66 : vector<8x32xf32>
    %c0_31 = arith.constant 0 : index
    %c0_32 = arith.constant 0 : index
    %68 = vector.load %arg6[%c0_31, %c0_32] : memref<8x64xf32, #tpu.memory_space<vmem>>, vector<8x32xf32>
    tpu.vector_store %arg6[%c0_31, %c0_32], %67 {strides = array<i32>} : memref<8x64xf32, #tpu.memory_space<vmem>>, vector<8x32xf32>,
    %69 = vector.extract_strided_slice %48 {offsets = [0, 128], sizes = [8, 128], strides = [1, 1]} : vector<8x256xf32> to vector<8x128xf32>
    %70 = arith.mulf %69, %16 : vector<8x128xf32>
    %71 = math.tanh %70 : vector<8x128xf32>
    %cst_33 = arith.constant 5.000000e-01 : f32
    %72 = vector.broadcast %cst_33 : f32 to vector<8x128xf32>
    %73 = arith.mulf %72, %71 : vector<8x128xf32>
    %cst_34 = arith.constant 5.000000e-01 : f32
    %74 = vector.broadcast %cst_34 : f32 to vector<8x128xf32>
    %75 = arith.addf %73, %74 : vector<8x128xf32>
    %76 = arith.select %13, %71, %75 : vector<8x128xi1>, vector<8x128xf32>
    %77 = vector.extract_strided_slice %76 {offsets = [0, 0], sizes = [8, 32], strides = [1, 1]} : vector<8x128xf32> to vector<8x32xf32>
    %78 = vector.extract_strided_slice %76 {offsets = [0, 32], sizes = [8, 32], strides = [1, 1]} : vector<8x128xf32> to vector<8x32xf32>
    %79 = vector.extract_strided_slice %76 {offsets = [0, 64], sizes = [8, 32], strides = [1, 1]} : vector<8x128xf32> to vector<8x32xf32>
    %80 = vector.extract_strided_slice %76 {offsets = [0, 96], sizes = [8, 32], strides = [1, 1]} : vector<8x128xf32> to vector<8x32xf32>
    %81 = arith.mulf %78, %18 : vector<8x32xf32>
    %82 = arith.mulf %77, %79 : vector<8x32xf32>
    %83 = arith.addf %81, %82 : vector<8x32xf32>
    %84 = math.tanh %83 : vector<8x32xf32>
    %85 = arith.mulf %80, %84 : vector<8x32xf32>
    %c0_35 = arith.constant 0 : index
    %c32 = arith.constant 32 : index
    %86 = vector.load %arg6[%c0_35, %c32] : memref<8x64xf32, #tpu.memory_space<vmem>>, vector<8x32xf32>
    tpu.vector_store %arg6[%c0_35, %c32], %85 {strides = array<i32>} : memref<8x64xf32, #tpu.memory_space<vmem>>, vector<8x32xf32>,
    %c0_36 = arith.constant 0 : index
    %c0_37 = arith.constant 0 : index
    %87 = vector.load %arg4[%c0_36, %c0_37] : memref<8x256xf32, #tpu.memory_space<vmem>>, vector<8x32xf32>
    tpu.vector_store %arg4[%c0_36, %c0_37], %85 {strides = array<i32>} : memref<8x256xf32, #tpu.memory_space<vmem>>, vector<8x32xf32>,
    %c0_38 = arith.constant 0 : index
    %c0_39 = arith.constant 0 : index
    %88 = vector.load %arg6[%c0_38, %c0_39] : memref<8x64xf32, #tpu.memory_space<vmem>>, vector<8x64xf32>
    %89 = arith.truncf %88 : vector<8x64xf32> to vector<8x64xbf16>
    %cst_40 = arith.constant dense<0.000000e+00> : vector<8x256xf32>
    %90 = tpu.matmul %89, %6, %cst_40 {dimension_numbers = #tpu.dot_dimension_numbers<[1], [0], [0], [1], [0, 0, 1, 1], [], []>} : vector<8x64xbf16>, vector<64x256xbf16>, vector<8x256xf32> -> vector<8x256xf32>
    %91 = vector.broadcast %7 : vector<1x256xf32> to vector<8x256xf32>
    %92 = arith.addf %90, %91 : vector<8x256xf32>
    %93 = vector.extract_strided_slice %92 {offsets = [0, 0], sizes = [8, 128], strides = [1, 1]} : vector<8x256xf32> to vector<8x128xf32>
    %c16 = arith.constant 16 : index
    %c0_41 = arith.constant 0 : index
    %94 = vector.load %arg5[%c16, %c0_41] : memref<64x128xf32, #tpu.memory_space<vmem>>, vector<8x128xf32>
    %95 = arith.addf %93, %94 : vector<8x128xf32>
    %96 = arith.mulf %95, %16 : vector<8x128xf32>
    %97 = math.tanh %96 : vector<8x128xf32>
    %cst_42 = arith.constant 5.000000e-01 : f32
    %98 = vector.broadcast %cst_42 : f32 to vector<8x128xf32>
    %99 = arith.mulf %98, %97 : vector<8x128xf32>
    %cst_43 = arith.constant 5.000000e-01 : f32
    %100 = vector.broadcast %cst_43 : f32 to vector<8x128xf32>
    %101 = arith.addf %99, %100 : vector<8x128xf32>
    %102 = arith.select %13, %97, %101 : vector<8x128xi1>, vector<8x128xf32>
    %103 = vector.extract_strided_slice %102 {offsets = [0, 0], sizes = [8, 32], strides = [1, 1]} : vector<8x128xf32> to vector<8x32xf32>
    %104 = vector.extract_strided_slice %102 {offsets = [0, 32], sizes = [8, 32], strides = [1, 1]} : vector<8x128xf32> to vector<8x32xf32>
    %105 = vector.extract_strided_slice %102 {offsets = [0, 64], sizes = [8, 32], strides = [1, 1]} : vector<8x128xf32> to vector<8x32xf32>
    %106 = vector.extract_strided_slice %102 {offsets = [0, 96], sizes = [8, 32], strides = [1, 1]} : vector<8x128xf32> to vector<8x32xf32>
    %107 = arith.mulf %104, %65 : vector<8x32xf32>
    %108 = arith.mulf %103, %105 : vector<8x32xf32>
    %109 = arith.addf %107, %108 : vector<8x32xf32>
    %110 = math.tanh %109 : vector<8x32xf32>
    %111 = arith.mulf %106, %110 : vector<8x32xf32>
    %c0_44 = arith.constant 0 : index
    %c0_45 = arith.constant 0 : index
    %112 = vector.load %arg6[%c0_44, %c0_45] : memref<8x64xf32, #tpu.memory_space<vmem>>, vector<8x32xf32>
    tpu.vector_store %arg6[%c0_44, %c0_45], %111 {strides = array<i32>} : memref<8x64xf32, #tpu.memory_space<vmem>>, vector<8x32xf32>,
    %113 = vector.extract_strided_slice %92 {offsets = [0, 128], sizes = [8, 128], strides = [1, 1]} : vector<8x256xf32> to vector<8x128xf32>
    %114 = arith.mulf %113, %16 : vector<8x128xf32>
    %115 = math.tanh %114 : vector<8x128xf32>
    %cst_46 = arith.constant 5.000000e-01 : f32
    %116 = vector.broadcast %cst_46 : f32 to vector<8x128xf32>
    %117 = arith.mulf %116, %115 : vector<8x128xf32>
    %cst_47 = arith.constant 5.000000e-01 : f32
    %118 = vector.broadcast %cst_47 : f32 to vector<8x128xf32>
    %119 = arith.addf %117, %118 : vector<8x128xf32>
    %120 = arith.select %13, %115, %119 : vector<8x128xi1>, vector<8x128xf32>
    %121 = vector.extract_strided_slice %120 {offsets = [0, 0], sizes = [8, 32], strides = [1, 1]} : vector<8x128xf32> to vector<8x32xf32>
    %122 = vector.extract_strided_slice %120 {offsets = [0, 32], sizes = [8, 32], strides = [1, 1]} : vector<8x128xf32> to vector<8x32xf32>
    %123 = vector.extract_strided_slice %120 {offsets = [0, 64], sizes = [8, 32], strides = [1, 1]} : vector<8x128xf32> to vector<8x32xf32>
    %124 = vector.extract_strided_slice %120 {offsets = [0, 96], sizes = [8, 32], strides = [1, 1]} : vector<8x128xf32> to vector<8x32xf32>
    %125 = arith.mulf %122, %83 : vector<8x32xf32>
    %126 = arith.mulf %121, %123 : vector<8x32xf32>
    %127 = arith.addf %125, %126 : vector<8x32xf32>
    %128 = math.tanh %127 : vector<8x32xf32>
    %129 = arith.mulf %124, %128 : vector<8x32xf32>
    %c0_48 = arith.constant 0 : index
    %c32_49 = arith.constant 32 : index
    %130 = vector.load %arg6[%c0_48, %c32_49] : memref<8x64xf32, #tpu.memory_space<vmem>>, vector<8x32xf32>
    tpu.vector_store %arg6[%c0_48, %c32_49], %129 {strides = array<i32>} : memref<8x64xf32, #tpu.memory_space<vmem>>, vector<8x32xf32>,
    %c0_50 = arith.constant 0 : index
    %c32_51 = arith.constant 32 : index
    %131 = vector.load %arg4[%c0_50, %c32_51] : memref<8x256xf32, #tpu.memory_space<vmem>>, vector<8x32xf32>
    tpu.vector_store %arg4[%c0_50, %c32_51], %129 {strides = array<i32>} : memref<8x256xf32, #tpu.memory_space<vmem>>, vector<8x32xf32>,
    %c0_52 = arith.constant 0 : index
    %c0_53 = arith.constant 0 : index
    %132 = vector.load %arg6[%c0_52, %c0_53] : memref<8x64xf32, #tpu.memory_space<vmem>>, vector<8x64xf32>
    %133 = arith.truncf %132 : vector<8x64xf32> to vector<8x64xbf16>
    %cst_54 = arith.constant dense<0.000000e+00> : vector<8x256xf32>
    %134 = tpu.matmul %133, %6, %cst_54 {dimension_numbers = #tpu.dot_dimension_numbers<[1], [0], [0], [1], [0, 0, 1, 1], [], []>} : vector<8x64xbf16>, vector<64x256xbf16>, vector<8x256xf32> -> vector<8x256xf32>
    %135 = vector.broadcast %7 : vector<1x256xf32> to vector<8x256xf32>
    %136 = arith.addf %134, %135 : vector<8x256xf32>
    %137 = vector.extract_strided_slice %136 {offsets = [0, 0], sizes = [8, 128], strides = [1, 1]} : vector<8x256xf32> to vector<8x128xf32>
    %c24 = arith.constant 24 : index
    %c0_55 = arith.constant 0 : index
    %138 = vector.load %arg5[%c24, %c0_55] : memref<64x128xf32, #tpu.memory_space<vmem>>, vector<8x128xf32>
    %139 = arith.addf %137, %138 : vector<8x128xf32>
    %140 = arith.mulf %139, %16 : vector<8x128xf32>
    %141 = math.tanh %140 : vector<8x128xf32>
    %cst_56 = arith.constant 5.000000e-01 : f32
    %142 = vector.broadcast %cst_56 : f32 to vector<8x128xf32>
    %143 = arith.mulf %142, %141 : vector<8x128xf32>
    %cst_57 = arith.constant 5.000000e-01 : f32
    %144 = vector.broadcast %cst_57 : f32 to vector<8x128xf32>
    %145 = arith.addf %143, %144 : vector<8x128xf32>
    %146 = arith.select %13, %141, %145 : vector<8x128xi1>, vector<8x128xf32>
    %147 = vector.extract_strided_slice %146 {offsets = [0, 0], sizes = [8, 32], strides = [1, 1]} : vector<8x128xf32> to vector<8x32xf32>
    %148 = vector.extract_strided_slice %146 {offsets = [0, 32], sizes = [8, 32], strides = [1, 1]} : vector<8x128xf32> to vector<8x32xf32>
    %149 = vector.extract_strided_slice %146 {offsets = [0, 64], sizes = [8, 32], strides = [1, 1]} : vector<8x128xf32> to vector<8x32xf32>
    %150 = vector.extract_strided_slice %146 {offsets = [0, 96], sizes = [8, 32], strides = [1, 1]} : vector<8x128xf32> to vector<8x32xf32>
    %151 = arith.mulf %148, %109 : vector<8x32xf32>
    %152 = arith.mulf %147, %149 : vector<8x32xf32>
    %153 = arith.addf %151, %152 : vector<8x32xf32>
    %154 = math.tanh %153 : vector<8x32xf32>
    %155 = arith.mulf %150, %154 : vector<8x32xf32>
    %c0_58 = arith.constant 0 : index
    %c0_59 = arith.constant 0 : index
    %156 = vector.load %arg6[%c0_58, %c0_59] : memref<8x64xf32, #tpu.memory_space<vmem>>, vector<8x32xf32>
    tpu.vector_store %arg6[%c0_58, %c0_59], %155 {strides = array<i32>} : memref<8x64xf32, #tpu.memory_space<vmem>>, vector<8x32xf32>,
    %157 = vector.extract_strided_slice %136 {offsets = [0, 128], sizes = [8, 128], strides = [1, 1]} : vector<8x256xf32> to vector<8x128xf32>
    %158 = arith.mulf %157, %16 : vector<8x128xf32>
    %159 = math.tanh %158 : vector<8x128xf32>
    %cst_60 = arith.constant 5.000000e-01 : f32
    %160 = vector.broadcast %cst_60 : f32 to vector<8x128xf32>
    %161 = arith.mulf %160, %159 : vector<8x128xf32>
    %cst_61 = arith.constant 5.000000e-01 : f32
    %162 = vector.broadcast %cst_61 : f32 to vector<8x128xf32>
    %163 = arith.addf %161, %162 : vector<8x128xf32>
    %164 = arith.select %13, %159, %163 : vector<8x128xi1>, vector<8x128xf32>
    %165 = vector.extract_strided_slice %164 {offsets = [0, 0], sizes = [8, 32], strides = [1, 1]} : vector<8x128xf32> to vector<8x32xf32>
    %166 = vector.extract_strided_slice %164 {offsets = [0, 32], sizes = [8, 32], strides = [1, 1]} : vector<8x128xf32> to vector<8x32xf32>
    %167 = vector.extract_strided_slice %164 {offsets = [0, 64], sizes = [8, 32], strides = [1, 1]} : vector<8x128xf32> to vector<8x32xf32>
    %168 = vector.extract_strided_slice %164 {offsets = [0, 96], sizes = [8, 32], strides = [1, 1]} : vector<8x128xf32> to vector<8x32xf32>
    %169 = arith.mulf %166, %127 : vector<8x32xf32>
    %170 = arith.mulf %165, %167 : vector<8x32xf32>
    %171 = arith.addf %169, %170 : vector<8x32xf32>
    %172 = math.tanh %171 : vector<8x32xf32>
    %173 = arith.mulf %168, %172 : vector<8x32xf32>
    %c0_62 = arith.constant 0 : index
    %c32_63 = arith.constant 32 : index
    %174 = vector.load %arg6[%c0_62, %c32_63] : memref<8x64xf32, #tpu.memory_space<vmem>>, vector<8x32xf32>
    tpu.vector_store %arg6[%c0_62, %c32_63], %173 {strides = array<i32>} : memref<8x64xf32, #tpu.memory_space<vmem>>, vector<8x32xf32>,
    %c0_64 = arith.constant 0 : index
    %c64 = arith.constant 64 : index
    %175 = vector.load %arg4[%c0_64, %c64] : memref<8x256xf32, #tpu.memory_space<vmem>>, vector<8x32xf32>
    tpu.vector_store %arg4[%c0_64, %c64], %173 {strides = array<i32>} : memref<8x256xf32, #tpu.memory_space<vmem>>, vector<8x32xf32>,
    %c0_65 = arith.constant 0 : index
    %c0_66 = arith.constant 0 : index
    %176 = vector.load %arg6[%c0_65, %c0_66] : memref<8x64xf32, #tpu.memory_space<vmem>>, vector<8x64xf32>
    %177 = arith.truncf %176 : vector<8x64xf32> to vector<8x64xbf16>
    %cst_67 = arith.constant dense<0.000000e+00> : vector<8x256xf32>
    %178 = tpu.matmul %177, %6, %cst_67 {dimension_numbers = #tpu.dot_dimension_numbers<[1], [0], [0], [1], [0, 0, 1, 1], [], []>} : vector<8x64xbf16>, vector<64x256xbf16>, vector<8x256xf32> -> vector<8x256xf32>
    %179 = vector.broadcast %7 : vector<1x256xf32> to vector<8x256xf32>
    %180 = arith.addf %178, %179 : vector<8x256xf32>
    %181 = vector.extract_strided_slice %180 {offsets = [0, 0], sizes = [8, 128], strides = [1, 1]} : vector<8x256xf32> to vector<8x128xf32>
    %c32_68 = arith.constant 32 : index
    %c0_69 = arith.constant 0 : index
    %182 = vector.load %arg5[%c32_68, %c0_69] : memref<64x128xf32, #tpu.memory_space<vmem>>, vector<8x128xf32>
    %183 = arith.addf %181, %182 : vector<8x128xf32>
    %184 = arith.mulf %183, %16 : vector<8x128xf32>
    %185 = math.tanh %184 : vector<8x128xf32>
    %cst_70 = arith.constant 5.000000e-01 : f32
    %186 = vector.broadcast %cst_70 : f32 to vector<8x128xf32>
    %187 = arith.mulf %186, %185 : vector<8x128xf32>
    %cst_71 = arith.constant 5.000000e-01 : f32
    %188 = vector.broadcast %cst_71 : f32 to vector<8x128xf32>
    %189 = arith.addf %187, %188 : vector<8x128xf32>
    %190 = arith.select %13, %185, %189 : vector<8x128xi1>, vector<8x128xf32>
    %191 = vector.extract_strided_slice %190 {offsets = [0, 0], sizes = [8, 32], strides = [1, 1]} : vector<8x128xf32> to vector<8x32xf32>
    %192 = vector.extract_strided_slice %190 {offsets = [0, 32], sizes = [8, 32], strides = [1, 1]} : vector<8x128xf32> to vector<8x32xf32>
    %193 = vector.extract_strided_slice %190 {offsets = [0, 64], sizes = [8, 32], strides = [1, 1]} : vector<8x128xf32> to vector<8x32xf32>
    %194 = vector.extract_strided_slice %190 {offsets = [0, 96], sizes = [8, 32], strides = [1, 1]} : vector<8x128xf32> to vector<8x32xf32>
    %195 = arith.mulf %192, %153 : vector<8x32xf32>
    %196 = arith.mulf %191, %193 : vector<8x32xf32>
    %197 = arith.addf %195, %196 : vector<8x32xf32>
    %198 = math.tanh %197 : vector<8x32xf32>
    %199 = arith.mulf %194, %198 : vector<8x32xf32>
    %c0_72 = arith.constant 0 : index
    %c0_73 = arith.constant 0 : index
    %200 = vector.load %arg6[%c0_72, %c0_73] : memref<8x64xf32, #tpu.memory_space<vmem>>, vector<8x32xf32>
    tpu.vector_store %arg6[%c0_72, %c0_73], %199 {strides = array<i32>} : memref<8x64xf32, #tpu.memory_space<vmem>>, vector<8x32xf32>,
    %201 = vector.extract_strided_slice %180 {offsets = [0, 128], sizes = [8, 128], strides = [1, 1]} : vector<8x256xf32> to vector<8x128xf32>
    %202 = arith.mulf %201, %16 : vector<8x128xf32>
    %203 = math.tanh %202 : vector<8x128xf32>
    %cst_74 = arith.constant 5.000000e-01 : f32
    %204 = vector.broadcast %cst_74 : f32 to vector<8x128xf32>
    %205 = arith.mulf %204, %203 : vector<8x128xf32>
    %cst_75 = arith.constant 5.000000e-01 : f32
    %206 = vector.broadcast %cst_75 : f32 to vector<8x128xf32>
    %207 = arith.addf %205, %206 : vector<8x128xf32>
    %208 = arith.select %13, %203, %207 : vector<8x128xi1>, vector<8x128xf32>
    %209 = vector.extract_strided_slice %208 {offsets = [0, 0], sizes = [8, 32], strides = [1, 1]} : vector<8x128xf32> to vector<8x32xf32>
    %210 = vector.extract_strided_slice %208 {offsets = [0, 32], sizes = [8, 32], strides = [1, 1]} : vector<8x128xf32> to vector<8x32xf32>
    %211 = vector.extract_strided_slice %208 {offsets = [0, 64], sizes = [8, 32], strides = [1, 1]} : vector<8x128xf32> to vector<8x32xf32>
    %212 = vector.extract_strided_slice %208 {offsets = [0, 96], sizes = [8, 32], strides = [1, 1]} : vector<8x128xf32> to vector<8x32xf32>
    %213 = arith.mulf %210, %171 : vector<8x32xf32>
    %214 = arith.mulf %209, %211 : vector<8x32xf32>
    %215 = arith.addf %213, %214 : vector<8x32xf32>
    %216 = math.tanh %215 : vector<8x32xf32>
    %217 = arith.mulf %212, %216 : vector<8x32xf32>
    %c0_76 = arith.constant 0 : index
    %c32_77 = arith.constant 32 : index
    %218 = vector.load %arg6[%c0_76, %c32_77] : memref<8x64xf32, #tpu.memory_space<vmem>>, vector<8x32xf32>
    tpu.vector_store %arg6[%c0_76, %c32_77], %217 {strides = array<i32>} : memref<8x64xf32, #tpu.memory_space<vmem>>, vector<8x32xf32>,
    %c0_78 = arith.constant 0 : index
    %c96 = arith.constant 96 : index
    %219 = vector.load %arg4[%c0_78, %c96] : memref<8x256xf32, #tpu.memory_space<vmem>>, vector<8x32xf32>
    tpu.vector_store %arg4[%c0_78, %c96], %217 {strides = array<i32>} : memref<8x256xf32, #tpu.memory_space<vmem>>, vector<8x32xf32>,
    %c0_79 = arith.constant 0 : index
    %c0_80 = arith.constant 0 : index
    %220 = vector.load %arg6[%c0_79, %c0_80] : memref<8x64xf32, #tpu.memory_space<vmem>>, vector<8x64xf32>
    %221 = arith.truncf %220 : vector<8x64xf32> to vector<8x64xbf16>
    %cst_81 = arith.constant dense<0.000000e+00> : vector<8x256xf32>
    %222 = tpu.matmul %221, %6, %cst_81 {dimension_numbers = #tpu.dot_dimension_numbers<[1], [0], [0], [1], [0, 0, 1, 1], [], []>} : vector<8x64xbf16>, vector<64x256xbf16>, vector<8x256xf32> -> vector<8x256xf32>
    %223 = vector.broadcast %7 : vector<1x256xf32> to vector<8x256xf32>
    %224 = arith.addf %222, %223 : vector<8x256xf32>
    %225 = vector.extract_strided_slice %224 {offsets = [0, 0], sizes = [8, 128], strides = [1, 1]} : vector<8x256xf32> to vector<8x128xf32>
    %c40 = arith.constant 40 : index
    %c0_82 = arith.constant 0 : index
    %226 = vector.load %arg5[%c40, %c0_82] : memref<64x128xf32, #tpu.memory_space<vmem>>, vector<8x128xf32>
    %227 = arith.addf %225, %226 : vector<8x128xf32>
    %228 = arith.mulf %227, %16 : vector<8x128xf32>
    %229 = math.tanh %228 : vector<8x128xf32>
    %cst_83 = arith.constant 5.000000e-01 : f32
    %230 = vector.broadcast %cst_83 : f32 to vector<8x128xf32>
    %231 = arith.mulf %230, %229 : vector<8x128xf32>
    %cst_84 = arith.constant 5.000000e-01 : f32
    %232 = vector.broadcast %cst_84 : f32 to vector<8x128xf32>
    %233 = arith.addf %231, %232 : vector<8x128xf32>
    %234 = arith.select %13, %229, %233 : vector<8x128xi1>, vector<8x128xf32>
    %235 = vector.extract_strided_slice %234 {offsets = [0, 0], sizes = [8, 32], strides = [1, 1]} : vector<8x128xf32> to vector<8x32xf32>
    %236 = vector.extract_strided_slice %234 {offsets = [0, 32], sizes = [8, 32], strides = [1, 1]} : vector<8x128xf32> to vector<8x32xf32>
    %237 = vector.extract_strided_slice %234 {offsets = [0, 64], sizes = [8, 32], strides = [1, 1]} : vector<8x128xf32> to vector<8x32xf32>
    %238 = vector.extract_strided_slice %234 {offsets = [0, 96], sizes = [8, 32], strides = [1, 1]} : vector<8x128xf32> to vector<8x32xf32>
    %239 = arith.mulf %236, %197 : vector<8x32xf32>
    %240 = arith.mulf %235, %237 : vector<8x32xf32>
    %241 = arith.addf %239, %240 : vector<8x32xf32>
    %242 = math.tanh %241 : vector<8x32xf32>
    %243 = arith.mulf %238, %242 : vector<8x32xf32>
    %c0_85 = arith.constant 0 : index
    %c0_86 = arith.constant 0 : index
    %244 = vector.load %arg6[%c0_85, %c0_86] : memref<8x64xf32, #tpu.memory_space<vmem>>, vector<8x32xf32>
    tpu.vector_store %arg6[%c0_85, %c0_86], %243 {strides = array<i32>} : memref<8x64xf32, #tpu.memory_space<vmem>>, vector<8x32xf32>,
    %245 = vector.extract_strided_slice %224 {offsets = [0, 128], sizes = [8, 128], strides = [1, 1]} : vector<8x256xf32> to vector<8x128xf32>
    %246 = arith.mulf %245, %16 : vector<8x128xf32>
    %247 = math.tanh %246 : vector<8x128xf32>
    %cst_87 = arith.constant 5.000000e-01 : f32
    %248 = vector.broadcast %cst_87 : f32 to vector<8x128xf32>
    %249 = arith.mulf %248, %247 : vector<8x128xf32>
    %cst_88 = arith.constant 5.000000e-01 : f32
    %250 = vector.broadcast %cst_88 : f32 to vector<8x128xf32>
    %251 = arith.addf %249, %250 : vector<8x128xf32>
    %252 = arith.select %13, %247, %251 : vector<8x128xi1>, vector<8x128xf32>
    %253 = vector.extract_strided_slice %252 {offsets = [0, 0], sizes = [8, 32], strides = [1, 1]} : vector<8x128xf32> to vector<8x32xf32>
    %254 = vector.extract_strided_slice %252 {offsets = [0, 32], sizes = [8, 32], strides = [1, 1]} : vector<8x128xf32> to vector<8x32xf32>
    %255 = vector.extract_strided_slice %252 {offsets = [0, 64], sizes = [8, 32], strides = [1, 1]} : vector<8x128xf32> to vector<8x32xf32>
    %256 = vector.extract_strided_slice %252 {offsets = [0, 96], sizes = [8, 32], strides = [1, 1]} : vector<8x128xf32> to vector<8x32xf32>
    %257 = arith.mulf %254, %215 : vector<8x32xf32>
    %258 = arith.mulf %253, %255 : vector<8x32xf32>
    %259 = arith.addf %257, %258 : vector<8x32xf32>
    %260 = math.tanh %259 : vector<8x32xf32>
    %261 = arith.mulf %256, %260 : vector<8x32xf32>
    %c0_89 = arith.constant 0 : index
    %c32_90 = arith.constant 32 : index
    %262 = vector.load %arg6[%c0_89, %c32_90] : memref<8x64xf32, #tpu.memory_space<vmem>>, vector<8x32xf32>
    tpu.vector_store %arg6[%c0_89, %c32_90], %261 {strides = array<i32>} : memref<8x64xf32, #tpu.memory_space<vmem>>, vector<8x32xf32>,
    %c0_91 = arith.constant 0 : index
    %c128 = arith.constant 128 : index
    %263 = vector.load %arg4[%c0_91, %c128] : memref<8x256xf32, #tpu.memory_space<vmem>>, vector<8x32xf32>
    tpu.vector_store %arg4[%c0_91, %c128], %261 {strides = array<i32>} : memref<8x256xf32, #tpu.memory_space<vmem>>, vector<8x32xf32>,
    %c0_92 = arith.constant 0 : index
    %c0_93 = arith.constant 0 : index
    %264 = vector.load %arg6[%c0_92, %c0_93] : memref<8x64xf32, #tpu.memory_space<vmem>>, vector<8x64xf32>
    %265 = arith.truncf %264 : vector<8x64xf32> to vector<8x64xbf16>
    %cst_94 = arith.constant dense<0.000000e+00> : vector<8x256xf32>
    %266 = tpu.matmul %265, %6, %cst_94 {dimension_numbers = #tpu.dot_dimension_numbers<[1], [0], [0], [1], [0, 0, 1, 1], [], []>} : vector<8x64xbf16>, vector<64x256xbf16>, vector<8x256xf32> -> vector<8x256xf32>
    %267 = vector.broadcast %7 : vector<1x256xf32> to vector<8x256xf32>
    %268 = arith.addf %266, %267 : vector<8x256xf32>
    %269 = vector.extract_strided_slice %268 {offsets = [0, 0], sizes = [8, 128], strides = [1, 1]} : vector<8x256xf32> to vector<8x128xf32>
    %c48 = arith.constant 48 : index
    %c0_95 = arith.constant 0 : index
    %270 = vector.load %arg5[%c48, %c0_95] : memref<64x128xf32, #tpu.memory_space<vmem>>, vector<8x128xf32>
    %271 = arith.addf %269, %270 : vector<8x128xf32>
    %272 = arith.mulf %271, %16 : vector<8x128xf32>
    %273 = math.tanh %272 : vector<8x128xf32>
    %cst_96 = arith.constant 5.000000e-01 : f32
    %274 = vector.broadcast %cst_96 : f32 to vector<8x128xf32>
    %275 = arith.mulf %274, %273 : vector<8x128xf32>
    %cst_97 = arith.constant 5.000000e-01 : f32
    %276 = vector.broadcast %cst_97 : f32 to vector<8x128xf32>
    %277 = arith.addf %275, %276 : vector<8x128xf32>
    %278 = arith.select %13, %273, %277 : vector<8x128xi1>, vector<8x128xf32>
    %279 = vector.extract_strided_slice %278 {offsets = [0, 0], sizes = [8, 32], strides = [1, 1]} : vector<8x128xf32> to vector<8x32xf32>
    %280 = vector.extract_strided_slice %278 {offsets = [0, 32], sizes = [8, 32], strides = [1, 1]} : vector<8x128xf32> to vector<8x32xf32>
    %281 = vector.extract_strided_slice %278 {offsets = [0, 64], sizes = [8, 32], strides = [1, 1]} : vector<8x128xf32> to vector<8x32xf32>
    %282 = vector.extract_strided_slice %278 {offsets = [0, 96], sizes = [8, 32], strides = [1, 1]} : vector<8x128xf32> to vector<8x32xf32>
    %283 = arith.mulf %280, %241 : vector<8x32xf32>
    %284 = arith.mulf %279, %281 : vector<8x32xf32>
    %285 = arith.addf %283, %284 : vector<8x32xf32>
    %286 = math.tanh %285 : vector<8x32xf32>
    %287 = arith.mulf %282, %286 : vector<8x32xf32>
    %c0_98 = arith.constant 0 : index
    %c0_99 = arith.constant 0 : index
    %288 = vector.load %arg6[%c0_98, %c0_99] : memref<8x64xf32, #tpu.memory_space<vmem>>, vector<8x32xf32>
    tpu.vector_store %arg6[%c0_98, %c0_99], %287 {strides = array<i32>} : memref<8x64xf32, #tpu.memory_space<vmem>>, vector<8x32xf32>,
    %289 = vector.extract_strided_slice %268 {offsets = [0, 128], sizes = [8, 128], strides = [1, 1]} : vector<8x256xf32> to vector<8x128xf32>
    %290 = arith.mulf %289, %16 : vector<8x128xf32>
    %291 = math.tanh %290 : vector<8x128xf32>
    %cst_100 = arith.constant 5.000000e-01 : f32
    %292 = vector.broadcast %cst_100 : f32 to vector<8x128xf32>
    %293 = arith.mulf %292, %291 : vector<8x128xf32>
    %cst_101 = arith.constant 5.000000e-01 : f32
    %294 = vector.broadcast %cst_101 : f32 to vector<8x128xf32>
    %295 = arith.addf %293, %294 : vector<8x128xf32>
    %296 = arith.select %13, %291, %295 : vector<8x128xi1>, vector<8x128xf32>
    %297 = vector.extract_strided_slice %296 {offsets = [0, 0], sizes = [8, 32], strides = [1, 1]} : vector<8x128xf32> to vector<8x32xf32>
    %298 = vector.extract_strided_slice %296 {offsets = [0, 32], sizes = [8, 32], strides = [1, 1]} : vector<8x128xf32> to vector<8x32xf32>
    %299 = vector.extract_strided_slice %296 {offsets = [0, 64], sizes = [8, 32], strides = [1, 1]} : vector<8x128xf32> to vector<8x32xf32>
    %300 = vector.extract_strided_slice %296 {offsets = [0, 96], sizes = [8, 32], strides = [1, 1]} : vector<8x128xf32> to vector<8x32xf32>
    %301 = arith.mulf %298, %259 : vector<8x32xf32>
    %302 = arith.mulf %297, %299 : vector<8x32xf32>
    %303 = arith.addf %301, %302 : vector<8x32xf32>
    %304 = math.tanh %303 : vector<8x32xf32>
    %305 = arith.mulf %300, %304 : vector<8x32xf32>
    %c0_102 = arith.constant 0 : index
    %c32_103 = arith.constant 32 : index
    %306 = vector.load %arg6[%c0_102, %c32_103] : memref<8x64xf32, #tpu.memory_space<vmem>>, vector<8x32xf32>
    tpu.vector_store %arg6[%c0_102, %c32_103], %305 {strides = array<i32>} : memref<8x64xf32, #tpu.memory_space<vmem>>, vector<8x32xf32>,
    %c0_104 = arith.constant 0 : index
    %c160 = arith.constant 160 : index
    %307 = vector.load %arg4[%c0_104, %c160] : memref<8x256xf32, #tpu.memory_space<vmem>>, vector<8x32xf32>
    tpu.vector_store %arg4[%c0_104, %c160], %305 {strides = array<i32>} : memref<8x256xf32, #tpu.memory_space<vmem>>, vector<8x32xf32>,
    %c0_105 = arith.constant 0 : index
    %c0_106 = arith.constant 0 : index
    %308 = vector.load %arg6[%c0_105, %c0_106] : memref<8x64xf32, #tpu.memory_space<vmem>>, vector<8x64xf32>
    %309 = arith.truncf %308 : vector<8x64xf32> to vector<8x64xbf16>
    %cst_107 = arith.constant dense<0.000000e+00> : vector<8x256xf32>
    %310 = tpu.matmul %309, %6, %cst_107 {dimension_numbers = #tpu.dot_dimension_numbers<[1], [0], [0], [1], [0, 0, 1, 1], [], []>} : vector<8x64xbf16>, vector<64x256xbf16>, vector<8x256xf32> -> vector<8x256xf32>
    %311 = vector.broadcast %7 : vector<1x256xf32> to vector<8x256xf32>
    %312 = arith.addf %310, %311 : vector<8x256xf32>
    %313 = vector.extract_strided_slice %312 {offsets = [0, 0], sizes = [8, 128], strides = [1, 1]} : vector<8x256xf32> to vector<8x128xf32>
    %c56 = arith.constant 56 : index
    %c0_108 = arith.constant 0 : index
    %314 = vector.load %arg5[%c56, %c0_108] : memref<64x128xf32, #tpu.memory_space<vmem>>, vector<8x128xf32>
    %315 = arith.addf %313, %314 : vector<8x128xf32>
    %316 = arith.mulf %315, %16 : vector<8x128xf32>
    %317 = math.tanh %316 : vector<8x128xf32>
    %cst_109 = arith.constant 5.000000e-01 : f32
    %318 = vector.broadcast %cst_109 : f32 to vector<8x128xf32>
    %319 = arith.mulf %318, %317 : vector<8x128xf32>
    %cst_110 = arith.constant 5.000000e-01 : f32
    %320 = vector.broadcast %cst_110 : f32 to vector<8x128xf32>
    %321 = arith.addf %319, %320 : vector<8x128xf32>
    %322 = arith.select %13, %317, %321 : vector<8x128xi1>, vector<8x128xf32>
    %323 = vector.extract_strided_slice %322 {offsets = [0, 0], sizes = [8, 32], strides = [1, 1]} : vector<8x128xf32> to vector<8x32xf32>
    %324 = vector.extract_strided_slice %322 {offsets = [0, 32], sizes = [8, 32], strides = [1, 1]} : vector<8x128xf32> to vector<8x32xf32>
    %325 = vector.extract_strided_slice %322 {offsets = [0, 64], sizes = [8, 32], strides = [1, 1]} : vector<8x128xf32> to vector<8x32xf32>
    %326 = vector.extract_strided_slice %322 {offsets = [0, 96], sizes = [8, 32], strides = [1, 1]} : vector<8x128xf32> to vector<8x32xf32>
    %327 = arith.mulf %324, %285 : vector<8x32xf32>
    %328 = arith.mulf %323, %325 : vector<8x32xf32>
    %329 = arith.addf %327, %328 : vector<8x32xf32>
    %330 = math.tanh %329 : vector<8x32xf32>
    %331 = arith.mulf %326, %330 : vector<8x32xf32>
    %c0_111 = arith.constant 0 : index
    %c0_112 = arith.constant 0 : index
    %332 = vector.load %arg6[%c0_111, %c0_112] : memref<8x64xf32, #tpu.memory_space<vmem>>, vector<8x32xf32>
    tpu.vector_store %arg6[%c0_111, %c0_112], %331 {strides = array<i32>} : memref<8x64xf32, #tpu.memory_space<vmem>>, vector<8x32xf32>,
    %333 = vector.extract_strided_slice %312 {offsets = [0, 128], sizes = [8, 128], strides = [1, 1]} : vector<8x256xf32> to vector<8x128xf32>
    %334 = arith.mulf %333, %16 : vector<8x128xf32>
    %335 = math.tanh %334 : vector<8x128xf32>
    %cst_113 = arith.constant 5.000000e-01 : f32
    %336 = vector.broadcast %cst_113 : f32 to vector<8x128xf32>
    %337 = arith.mulf %336, %335 : vector<8x128xf32>
    %cst_114 = arith.constant 5.000000e-01 : f32
    %338 = vector.broadcast %cst_114 : f32 to vector<8x128xf32>
    %339 = arith.addf %337, %338 : vector<8x128xf32>
    %340 = arith.select %13, %335, %339 : vector<8x128xi1>, vector<8x128xf32>
    %341 = vector.extract_strided_slice %340 {offsets = [0, 0], sizes = [8, 32], strides = [1, 1]} : vector<8x128xf32> to vector<8x32xf32>
    %342 = vector.extract_strided_slice %340 {offsets = [0, 32], sizes = [8, 32], strides = [1, 1]} : vector<8x128xf32> to vector<8x32xf32>
    %343 = vector.extract_strided_slice %340 {offsets = [0, 64], sizes = [8, 32], strides = [1, 1]} : vector<8x128xf32> to vector<8x32xf32>
    %344 = vector.extract_strided_slice %340 {offsets = [0, 96], sizes = [8, 32], strides = [1, 1]} : vector<8x128xf32> to vector<8x32xf32>
    %345 = arith.mulf %342, %303 : vector<8x32xf32>
    %346 = arith.mulf %341, %343 : vector<8x32xf32>
    %347 = arith.addf %345, %346 : vector<8x32xf32>
    %348 = math.tanh %347 : vector<8x32xf32>
    %349 = arith.mulf %344, %348 : vector<8x32xf32>
    %c0_115 = arith.constant 0 : index
    %c32_116 = arith.constant 32 : index
    %350 = vector.load %arg6[%c0_115, %c32_116] : memref<8x64xf32, #tpu.memory_space<vmem>>, vector<8x32xf32>
    tpu.vector_store %arg6[%c0_115, %c32_116], %349 {strides = array<i32>} : memref<8x64xf32, #tpu.memory_space<vmem>>, vector<8x32xf32>,
    %c0_117 = arith.constant 0 : index
    %c192 = arith.constant 192 : index
    %351 = vector.load %arg4[%c0_117, %c192] : memref<8x256xf32, #tpu.memory_space<vmem>>, vector<8x32xf32>
    tpu.vector_store %arg4[%c0_117, %c192], %349 {strides = array<i32>} : memref<8x256xf32, #tpu.memory_space<vmem>>, vector<8x32xf32>,
    %c0_118 = arith.constant 0 : index
    %c0_119 = arith.constant 0 : index
    %352 = vector.load %arg6[%c0_118, %c0_119] : memref<8x64xf32, #tpu.memory_space<vmem>>, vector<8x64xf32>
    %353 = arith.truncf %352 : vector<8x64xf32> to vector<8x64xbf16>
    %cst_120 = arith.constant dense<0.000000e+00> : vector<8x256xf32>
    %354 = tpu.matmul %353, %6, %cst_120 {dimension_numbers = #tpu.dot_dimension_numbers<[1], [0], [0], [1], [0, 0, 1, 1], [], []>} : vector<8x64xbf16>, vector<64x256xbf16>, vector<8x256xf32> -> vector<8x256xf32>
    %355 = vector.broadcast %7 : vector<1x256xf32> to vector<8x256xf32>
    %356 = arith.addf %354, %355 : vector<8x256xf32>
    %357 = vector.extract_strided_slice %356 {offsets = [0, 128], sizes = [8, 128], strides = [1, 1]} : vector<8x256xf32> to vector<8x128xf32>
    %358 = arith.mulf %357, %16 : vector<8x128xf32>
    %359 = math.tanh %358 : vector<8x128xf32>
    %cst_121 = arith.constant 5.000000e-01 : f32
    %360 = vector.broadcast %cst_121 : f32 to vector<8x128xf32>
    %361 = arith.mulf %360, %359 : vector<8x128xf32>
    %cst_122 = arith.constant 5.000000e-01 : f32
    %362 = vector.broadcast %cst_122 : f32 to vector<8x128xf32>
    %363 = arith.addf %361, %362 : vector<8x128xf32>
    %364 = arith.select %13, %359, %363 : vector<8x128xi1>, vector<8x128xf32>
    %365 = vector.extract_strided_slice %364 {offsets = [0, 0], sizes = [8, 32], strides = [1, 1]} : vector<8x128xf32> to vector<8x32xf32>
    %366 = vector.extract_strided_slice %364 {offsets = [0, 32], sizes = [8, 32], strides = [1, 1]} : vector<8x128xf32> to vector<8x32xf32>
    %367 = vector.extract_strided_slice %364 {offsets = [0, 64], sizes = [8, 32], strides = [1, 1]} : vector<8x128xf32> to vector<8x32xf32>
    %368 = vector.extract_strided_slice %364 {offsets = [0, 96], sizes = [8, 32], strides = [1, 1]} : vector<8x128xf32> to vector<8x32xf32>
    %369 = arith.mulf %366, %347 : vector<8x32xf32>
    %370 = arith.mulf %365, %367 : vector<8x32xf32>
    %371 = arith.addf %369, %370 : vector<8x32xf32>
    %372 = math.tanh %371 : vector<8x32xf32>
    %373 = arith.mulf %368, %372 : vector<8x32xf32>
    %c0_123 = arith.constant 0 : index
    %c32_124 = arith.constant 32 : index
    %374 = vector.load %arg6[%c0_123, %c32_124] : memref<8x64xf32, #tpu.memory_space<vmem>>, vector<8x32xf32>
    tpu.vector_store %arg6[%c0_123, %c32_124], %373 {strides = array<i32>} : memref<8x64xf32, #tpu.memory_space<vmem>>, vector<8x32xf32>,
    %c0_125 = arith.constant 0 : index
    %c224 = arith.constant 224 : index
    %375 = vector.load %arg4[%c0_125, %c224] : memref<8x256xf32, #tpu.memory_space<vmem>>, vector<8x32xf32>
    tpu.vector_store %arg4[%c0_125, %c224], %373 {strides = array<i32>} : memref<8x256xf32, #tpu.memory_space<vmem>>, vector<8x32xf32>,
    return
  }
}

</mosaic_0001>

<bundles_post_ra>
// kernel: tpu_custom_call.1
= control target key start
LH: loop header
LB: loop body
LE: loop exit
PB: predicated region body
PF: predicated region fallthrough
CT: control target
= control target key end

     0   :  { %9 = vsyncpa [#allocation5], 0  ;;  %s1717_s0 = inlined_call_operand.vmem [shape: bf16[64,32], index: 0, kind: input, shape index: {}]   ;;  %s1718_s1 = inlined_call_operand.vmem [shape: bf16[32,128], index: 1, kind: input, shape index: {}]   ;;  %s1719_s2 = inlined_call_operand.hbm [shape: bf16[64,256], index: 2, kind: input, shape index: {}]   ;;  %s1720_s3 = inlined_call_operand.vmem [shape: f32[1,256], index: 3, kind: input, shape index: {}]   ;;  %s1721_s4 = inlined_call_operand.hbm [shape: f32[8,256], index: 4, kind: output, shape index: {}]  }
   0x1   :  { %10 = vsyncpa [#allocation6], 0  ;;  %s1314_s15 = smov [#allocation4]   ;;  %s1266_s19 = scalar_lea.hbm %s1719_s2, 1024 }
   0x2   :  { %s20_s16 = sshll.u32 %s1314_s15, 4  ;;  %p1267_p0 = scmp.ne.s32.totalorder %s1719_s2, %s1266_s19  ;;  %s21_s16 = int_to_ptr.vmem [resolvable:$true] %s20_s16 }
   0x3   :  { %p1270_p1 = scmp.lt.u32.totalorder %s1266_s19, %s1719_s2 }
   0x5   :  { %p1272_p2 = pnand %p1270_p1, %p1267_p0 }
   0x7   :  { %1275 = shalt.err (!%p1272_p2)
}
   0x8   :  { %s1276_s24 = scalar_lea.vmem %s21_s16, 1024  ;;  %p1281_p4 = scmp.lt.s32.totalorder %s21_s16, %s21_s16 }
   0x9   :  { %p1277_p3 = scmp.ne.s32.totalorder %s21_s16, %s1276_s24  ;;  %p1282_p5 = scmp.lt.s32.totalorder %s1276_s24, %s1276_s24 }
   0xb   :  { %p1283_p6 = por %p1282_p5, %p1281_p4 }
   0xd   :  { %p1284_p7 = pnand %p1283_p6, %p1277_p3 }
   0xf   :  { %1287 = shalt.err (!%p1284_p7)
}
  0x10   :  { %s1315_s25 = smov 128   ;;  %s1316_s26 = smov 8  }
  0x11   :  { %26 = dma.hbm_to_vmem [thread:$0]  %s1719_s2, 1024, %s21_s16, [#allocation5], %s1315_s25, %s1315_s25, %s1316_s26  }
  0x12   :  { %1310 = dma.done.wait [#allocation5], 1024  }
  0x13   :  { %1311 = vsyncadd [#allocation5], 4294966272  ;;  %vm163_vm0 = vcmask 523264   ;;  %v1317_v0 = vmov 0   ;;  %v1318_v1 = vmov 0.0   ;;  %v1190_v6 = vld [vmem:[%s1718_s1] sm:$0xff]   ;;  %v174_v16 = vlaneseq }
  0x14   :  { %268 = vmatprep.mubr.bf16.mxu1 %v1317_v0  ;;  %164 = vst.msk [vmem:[#allocation3] sm:$0xff] %vm163_vm0, %v1318_v1  ;;  %v1363_v2 = vld [vmem:[#allocation4 + $0x4] ss:$8 sps:$4 sm:$0xff]   ;;  %v1365_v3 = vld [vmem:[#allocation4] ss:$8 sps:$4 sm:$0xff]   ;;  %1162 = vmatprep.subr.bf16.mxu0 %v1190_v6  ;;  %vm77_vm1 = vcmask 261120  }
  0x15   :  { %236 = vmatprep.subr.bf16.mxu1 %v1363_v2  ;;  %v1368_v4 = vld [vmem:[#allocation4 + $0x14] ss:$8 sps:$4 sm:$0xff]   ;;  %v1370_v5 = vld [vmem:[#allocation4 + $0x10] ss:$8 sps:$4 sm:$0xff]   ;;  %v1377_v7 = vld [vmem:[#allocation4 + $0x24] ss:$8 sps:$4 sm:$0xff]   ;;  %1163 = vmatpush3.bf16.msra.mxu0 %v1190_v6 }
  0x16   :  { %237 = vmatpush1.bf16.msra.mxu1 %v1365_v3  ;;  %v1194_v8 = vld [vmem:[%s1718_s1 + $0x8] sm:$0xff]   ;;  %v1197_v10 = vld [vmem:[%s1717_s0] sm:$0xff]   ;;  %v1421_v17 = vshrl.u32 %v174_v16, 7  ;;  %v175_v18 = vand.u32 127, %v174_v16  ;;  %v1319_v30 = vmov 0.5   ;;  %s1321_s11 = smov 32  }
  0x17   :  { %238 = vmatprep.subr.bf16.mxu1 %v1368_v4  ;;  %v1382_v9 = vld [vmem:[#allocation4 + $0x20] ss:$8 sps:$4 sm:$0xff]   ;;  %1164 = vmatprep.subr.bf16.mxu0 %v1194_v8  ;;  %v1389_v11 = vld [vmem:[#allocation4 + $0x34] ss:$8 sps:$4 sm:$0xff]   ;;  %v1396_v13 = vld [vmem:[#allocation4 + $0x30] ss:$8 sps:$4 sm:$0xff]  }
  0x18   :  { %1166 = vmatprep.mubr.msk.bf16.mxu0 %vm77_vm1, %v1197_v10  ;;  %v1199_v12 = vld [vmem:[%s1717_s0 + $0x8] sm:$0xff]   ;;  %v185_v19 = vsub.s32 0, %v1421_v17  ;;  %v173_v20 = vld [vmem:[%s1720_s3] sm:$0x3]  ;;  %vm176_vm2 = vcmp.ge.s32.totalorder %v175_v18, 64  ;;  %vm177_vm3 = vcmp.lt.s32.totalorder %v175_v18, 96 }
  0x19   :  { %1165 = vmatpush3.bf16.msra.mxu0 %v1194_v8  ;;  %vm1433_vm4 = vmand %vm176_vm2, %vm177_vm3  ;;  %s1320_s3 = smov 64   ;;  %v1200_v45 = vld [vmem:[%s1717_s0 + $0x10] sm:$0xff]   ;;  %v1201_v46 = vld [vmem:[%s1717_s0 + $0x18] sm:$0xff]   ;;  %v189_v57 = vsub.s32 1, %v1421_v17  ;;  %vm406_vm5 = vcmask 523520   ;;  %s1322_s0 = smov 96  }
  0x1a   :  { %239 = vmatpush1.bf16.msra.mxu1 %v1370_v5  ;;  %310 = vmatprep.subr.bf16.mxu0 %v1363_v2  ;;  %v1431_v24 = vrot.slane %v173_v20, %v185_v19  ;;  %v1440_v31 = vsel %vm1433_vm4, 1.0, %v1319_v30  ;;  %vm620_vm6 = vcmask 785920   ;;  %vm724_vm7 = vcmask 1048320   ;;  %s1323_s16 = smov [#allocation7]  }
  0x1b   :  { %240 = vmatprep.subr.bf16.mxu1 %v1377_v7  ;;  %v180_v14 = vld [vmem:[#allocation3] sm:$0xff]  ;;  %v1478_v58 = vrot.slane %v173_v20, %v189_v57  ;;  %s1120_s17 = sshll.u32 %s1323_s16, 4  ;;  %s1121_s17 = int_to_ptr.vmem [resolvable:$true] %s1120_s17 }
  0x1c   :  { %1167 = vmatmul.mubr.msk.bf16.vlgmr.msra.gmra.mrb[0].mxu0 %vm77_vm1, %v1199_v12  ;;  %v181_v15 = vpack.c.bf16 %v180_v14, %v180_v14  ;;  %s1288_s18 = scalar_lea.vmem %s1121_s17, 256  ;;  %p1293_p9 = scmp.lt.s32.totalorder %s1121_s17, %s1121_s17 }
  0x1d   :  { %311 = vmatpush1.bf16.msra.mxu0 %v1365_v3  ;;  %1170 = vmatprep.mubr.msk.bf16.mxu0 %vm77_vm1, %v1200_v45  ;;  %p1289_p8 = scmp.ne.s32.totalorder %s1121_s17, %s1288_s18  ;;  %p1294_p10 = scmp.lt.s32.totalorder %s1288_s18, %s1288_s18 }
  0x1e   :  { %241 = vmatpush1.bf16.msra.mxu1 %v1382_v9  ;;  %312 = vmatprep.subr.bf16.mxu0 %v1368_v4 }
  0x1f   :  { %242 = vmatprep.subr.bf16.mxu1 %v1389_v11  ;;  %p1295_p11 = por %p1294_p10, %p1293_p9 }
  0x21   :  { %313 = vmatpush1.bf16.msra.mxu0 %v1370_v5  ;;  %p1296_p12 = pnand %p1295_p11, %p1289_p8 }
  0x22   :  { %243 = vmatpush1.bf16.msra.mxu1 %v1396_v13  ;;  %314 = vmatprep.subr.bf16.mxu0 %v1377_v7 }
  0x23   :  { %417 = vmatprep.subr.bf16.mxu1 %v1363_v2 }
  0x24   :  { %1171 = vmatmul.mubr.msk.bf16.gmra.mrb[4].mxu0 %vm77_vm1, %v1201_v46 }
  0x25   :  { %1147 = vmatmul.mubr.msk.bf16.vlgmr.msra.gmra.mrb[0].mxu1 %vm163_vm0, %v181_v15  ;;  %315 = vmatpush1.bf16.msra.mxu0 %v1382_v9 }
  0x26   :  { %418 = vmatpush1.bf16.msra.mxu1 %v1365_v3  ;;  %449 = vmatprep.mubr.bf16.mxu1 %v1317_v0 }
  0x27   :  { %419 = vmatprep.subr.bf16.mxu1 %v1368_v4  ;;  %316 = vmatprep.subr.bf16.mxu0 %v1389_v11 }
  0x28   :  { %342 = vmatprep.mubr.bf16.mxu0 %v1317_v0 }
  0x29   :  { %317 = vmatpush1.bf16.msra.mxu0 %v1396_v13 }
  0x2a   :  { %420 = vmatpush1.bf16.msra.mxu1 %v1370_v5  ;;  %520 = vmatprep.subr.bf16.mxu0 %v1363_v2 }
  0x2b   :  { %421 = vmatprep.subr.bf16.mxu1 %v1377_v7 }
  0x2e   :  { %422 = vmatpush1.bf16.msra.mxu1 %v1382_v9 }
  0x2f   :  { %423 = vmatprep.subr.bf16.mxu1 %v1389_v11 }
  0x32   :  { %424 = vmatpush1.bf16.msra.mxu1 %v1396_v13 }
  0x33   :  { %627 = vmatprep.subr.bf16.mxu1 %v1363_v2 }
  0xef   :  { %v1427_v21 = vpop.f32.mrb[0].mxu0 }
  0xf0   :  { %v124_v22 = vpop.f32.mrb[1].mxu0 }
  0xf1   :  { %v1429_v23 = vpop.f32.mrb[2].mxu0 }
  0xf2   :  { %v127_v25 = vpop.f32.mrb[3].mxu0 }
  0xf7   :  { %v1458_v50 = vpop.f32.mrb[4].mxu0 }
  0xf8   :  { %v270_v27 = vpop.f32.mrb[0].mxu1  ;;  %v1460_v51 = vpop.f32.mrb[5].mxu0 }
  0xf9   :  { %v271_v28 = vadd.f32 %v270_v27, %v1431_v24  ;;  %v272_v29 = vpop.f32.mrb[1].mxu1  ;;  %v1462_v52 = vpop.f32.mrb[6].mxu0 }
  0xfa   :  { %v273_v32 = vpop.f32.mrb[2].mxu1  ;;  %v1464_v53 = vpop.f32.mrb[7].mxu0 }
  0xfb   :  { %v277_v33 = vadd.f32 %v271_v28, %v124_v22  ;;  %v274_v34 = vpop.f32.mrb[3].mxu1 }
  0xfd   :  { %v278_v35 = vmul.f32 %v277_v33, %v1440_v31 }
  0xff   :  { %1202 = vtanh.f32 %v278_v35 }
 0x109   :  { %v1203_v36 = vpop.eup %1202 }
 0x10a   :  { %v280_v37 = vmul.f32 0.5, %v1203_v36 }
 0x10c   :  { %v281_v38 = vadd.f32 0.5, %v280_v37 }
 0x10e   :  { %v282_v39 = vsel %vm1433_vm4, %v1203_v36, %v281_v38 }
 0x10f   :  { %285 = vrot.lane.b32.xlu0 %v282_v39, %s1320_s3  ;;  %v283_v42 = vmul.f32 0.0, %v282_v39 }
 0x181   :  { %v286_v40 = vpop.permute.xlu0 %285 }
 0x182   :  { %v288_v41 = vmul.f32 %v286_v40, %v282_v39 }
 0x184   :  { %290 = vrot.lane.b32.xlu0 %v288_v41, %s1321_s11 }
 0x1f6   :  { %v291_v43 = vpop.permute.xlu0 %290 }
 0x1f7   :  { %v293_v44 = vadd.f32 %v291_v43, %v283_v42 }
 0x1f9   :  { %1204 = vtanh.f32 %v293_v44 }
 0x203   :  { %v1205_v47 = vpop.eup %1204 }
 0x204   :  { %296 = vrot.lane.b32.xlu1 %v1205_v47, %s1320_s3 }
 0x276   :  { %v297_v48 = vpop.permute.xlu1 %296 }
 0x277   :  { %v299_v49 = vmul.f32 %v297_v48, %v282_v39 }
 0x279   :  { %301 = vrot.lane.b32.xlu1 %v299_v49, %s1321_s11 }
 0x2eb   :  { %v302_v54 = vpop.permute.xlu1 %301 }
 0x2ec   :  { %304 = vst.msk [vmem:[#allocation3] sm:$0xff] %vm77_vm1, %v302_v54 }
 0x2f3   :  { %v305_v55 = vld [vmem:[#allocation3] sm:$0xff] }
 0x2f4   :  { %v306_v56 = vpack.c.bf16 %v305_v55, %v305_v55 }
 0x2f6   :  { %1148 = vmatmul.mubr.msk.bf16.vlgmr.msra.gmra.mrb[8].mxu0 %vm163_vm0, %v306_v56 }
 0x2f7   :  { %521 = vmatpush1.bf16.msra.mxu0 %v1365_v3  ;;  %552 = vmatprep.mubr.bf16.mxu0 %v1317_v0 }
 0x2f8   :  { %522 = vmatprep.subr.bf16.mxu0 %v1368_v4 }
 0x2fb   :  { %523 = vmatpush1.bf16.msra.mxu0 %v1370_v5 }
 0x2fc   :  { %524 = vmatprep.subr.bf16.mxu0 %v1377_v7 }
 0x2ff   :  { %525 = vmatpush1.bf16.msra.mxu0 %v1382_v9 }
 0x300   :  { %526 = vmatprep.subr.bf16.mxu0 %v1389_v11 }
 0x303   :  { %527 = vmatpush1.bf16.msra.mxu0 %v1396_v13 }
 0x304   :  { %731 = vmatprep.subr.bf16.mxu0 %v1363_v2 }
 0x3c9   :  { %v344_v59 = vpop.f32.mrb[8].mxu0 }
 0x3ca   :  { %v345_v60 = vadd.f32 %v344_v59, %v1431_v24  ;;  %v346_v61 = vpop.f32.mrb[9].mxu0 }
 0x3cb   :  { %v347_v62 = vadd.f32 %v346_v61, %v1478_v58  ;;  %v348_v63 = vpop.f32.mrb[10].mxu0 }
 0x3cc   :  { %v352_v1 = vadd.f32 %v345_v60, %v127_v25  ;;  %v349_v6 = vpop.f32.mrb[11].mxu0 }
 0x3cd   :  { %v380_v8 = vmul.f32 %v347_v62, %v1440_v31 }
 0x3ce   :  { %v353_v10 = vmul.f32 %v352_v1, %v1440_v31 }
 0x3cf   :  { %1206 = vtanh.f32 %v380_v8 }
 0x3d0   :  { %1208 = vtanh.f32 %v353_v10 }
 0x3d9   :  { %v1207_v12 = vpop.eup %1206 }
 0x3da   :  { %v1209_v14 = vpop.eup %1208  ;;  %v382_v15 = vmul.f32 0.5, %v1207_v12 }
 0x3db   :  { %v355_v16 = vmul.f32 0.5, %v1209_v14 }
 0x3dc   :  { %v383_v17 = vadd.f32 0.5, %v382_v15 }
 0x3dd   :  { %v356_v18 = vadd.f32 0.5, %v355_v16 }
 0x3de   :  { %v384_v19 = vsel %vm1433_vm4, %v1207_v12, %v383_v17 }
 0x3df   :  { %387 = vrot.lane.b32.xlu1 %v384_v19, %s1320_s3  ;;  %v357_v20 = vsel %vm1433_vm4, %v1209_v14, %v356_v18  ;;  %v385_v29 = vmul.f32 0.0, %v384_v19 }
 0x3e0   :  { %360 = vrot.lane.b32.xlu0 %v357_v20, %s1320_s3  ;;  %v358_v32 = vmul.f32 %v357_v20, %v293_v44 }
 0x451   :  { %v388_v22 = vpop.permute.xlu1 %387 }
 0x452   :  { %v390_v25 = vmul.f32 %v388_v22, %v384_v19  ;;  %v361_v27 = vpop.permute.xlu0 %360 }
 0x453   :  { %v363_v28 = vmul.f32 %v361_v27, %v357_v20 }
 0x454   :  { %392 = vrot.lane.b32.xlu1 %v390_v25, %s1321_s11 }
 0x455   :  { %365 = vrot.lane.b32.xlu0 %v363_v28, %s1321_s11 }
 0x4c6   :  { %v393_v30 = vpop.permute.xlu1 %392 }
 0x4c7   :  { %v395_v33 = vadd.f32 %v393_v30, %v385_v29  ;;  %v366_v34 = vpop.permute.xlu0 %365 }
 0x4c8   :  { %v368_v35 = vadd.f32 %v366_v34, %v358_v32 }
 0x4c9   :  { %1210 = vtanh.f32 %v395_v33 }
 0x4ca   :  { %1212 = vtanh.f32 %v368_v35 }
 0x4d3   :  { %v1211_v36 = vpop.eup %1210 }
 0x4d4   :  { %v1213_v37 = vpop.eup %1212  ;;  %398 = vrot.lane.b32.xlu1 %v1211_v36, %s1320_s3 }
 0x4d5   :  { %371 = vrot.lane.b32.xlu0 %v1213_v37, %s1320_s3 }
 0x546   :  { %v399_v38 = vpop.permute.xlu1 %398 }
 0x547   :  { %v1494_v39 = vmul.f32 %v399_v38, %v384_v19  ;;  %v372_v40 = vpop.permute.xlu0 %371 }
 0x548   :  { %v374_v41 = vmul.f32 %v372_v40, %v357_v20 }
 0x549   :  { %403 = vrot.lane.b32.xlu1 %v1494_v39, %s1320_s3 }
 0x54a   :  { %376 = vrot.lane.b32.xlu0 %v374_v41, %s1321_s11 }
 0x5bb   :  { %v404_v43 = vpop.permute.xlu1 %403 }
 0x5bc   :  { %v377_v42 = vpop.permute.xlu0 %376 }
 0x5bd   :  { %379 = vst.msk [vmem:[#allocation3] sm:$0xff] %vm77_vm1, %v377_v42 }
 0x5be   :  { %407 = vst.msk [vmem:[#allocation3] sm:$0xff] %vm406_vm5, %v404_v43 }
 0x5c5   :  { %v412_v44 = vld [vmem:[#allocation3] sm:$0xff] }
 0x5c6   :  { %v413_v45 = vpack.c.bf16 %v412_v44, %v412_v44 }
 0x5c8   :  { %1149 = vmatmul.mubr.msk.bf16.vlgmr.msra.gmra.mrb[4].mxu1 %vm163_vm0, %v413_v45 }
 0x5c9   :  { %628 = vmatpush1.bf16.msra.mxu1 %v1365_v3  ;;  %659 = vmatprep.mubr.bf16.mxu1 %v1317_v0 }
 0x5ca   :  { %629 = vmatprep.subr.bf16.mxu1 %v1368_v4 }
 0x5cd   :  { %630 = vmatpush1.bf16.msra.mxu1 %v1370_v5 }
 0x5ce   :  { %631 = vmatprep.subr.bf16.mxu1 %v1377_v7 }
 0x5d1   :  { %632 = vmatpush1.bf16.msra.mxu1 %v1382_v9 }
 0x5d2   :  { %633 = vmatprep.subr.bf16.mxu1 %v1389_v11 }
 0x5d5   :  { %634 = vmatpush1.bf16.msra.mxu1 %v1396_v13 }
 0x5d6   :  { %837 = vmatprep.subr.bf16.mxu1 %v1363_v2 }
 0x69b   :  { %v451_v46 = vpop.f32.mrb[4].mxu1 }
 0x69c   :  { %v452_v47 = vadd.f32 %v451_v46, %v1431_v24  ;;  %v453_v48 = vpop.f32.mrb[5].mxu1 }
 0x69d   :  { %v454_v49 = vadd.f32 %v453_v48, %v1478_v58  ;;  %v455_v54 = vpop.f32.mrb[6].mxu1 }
 0x69e   :  { %v459_v55 = vadd.f32 %v1427_v21, %v452_v47  ;;  %v456_v56 = vpop.f32.mrb[7].mxu1 }
 0x69f   :  { %v487_v57 = vmul.f32 %v454_v49, %v1440_v31 }
 0x6a0   :  { %v460_v59 = vmul.f32 %v459_v55, %v1440_v31 }
 0x6a1   :  { %1214 = vtanh.f32 %v487_v57 }
 0x6a2   :  { %1216 = vtanh.f32 %v460_v59 }
 0x6ab   :  { %v1215_v60 = vpop.eup %1214 }
 0x6ac   :  { %v1217_v61 = vpop.eup %1216  ;;  %v489_v62 = vmul.f32 0.5, %v1215_v60 }
 0x6ad   :  { %v462_v63 = vmul.f32 0.5, %v1217_v61 }
 0x6ae   :  { %v490_v1 = vadd.f32 0.5, %v489_v62 }
 0x6af   :  { %v463_v6 = vadd.f32 0.5, %v462_v63 }
 0x6b0   :  { %v491_v8 = vsel %vm1433_vm4, %v1215_v60, %v490_v1 }
 0x6b1   :  { %494 = vrot.lane.b32.xlu1 %v491_v8, %s1320_s3  ;;  %v464_v21 = vsel %vm1433_vm4, %v1217_v61, %v463_v6  ;;  %v492_v16 = vmul.f32 %v491_v8, %v395_v33 }
 0x6b2   :  { %467 = vrot.lane.b32.xlu0 %v464_v21, %s1320_s3  ;;  %v465_v18 = vmul.f32 %v464_v21, %v368_v35 }
 0x723   :  { %v495_v10 = vpop.permute.xlu1 %494 }
 0x724   :  { %v497_v12 = vmul.f32 %v495_v10, %v491_v8  ;;  %v468_v14 = vpop.permute.xlu0 %467 }
 0x725   :  { %v470_v15 = vmul.f32 %v468_v14, %v464_v21 }
 0x726   :  { %499 = vrot.lane.b32.xlu1 %v497_v12, %s1321_s11 }
 0x727   :  { %472 = vrot.lane.b32.xlu0 %v470_v15, %s1321_s11 }
 0x798   :  { %v500_v17 = vpop.permute.xlu1 %499 }
 0x799   :  { %v502_v19 = vadd.f32 %v500_v17, %v492_v16  ;;  %v473_v20 = vpop.permute.xlu0 %472 }
 0x79a   :  { %v475_v22 = vadd.f32 %v473_v20, %v465_v18 }
 0x79b   :  { %1218 = vtanh.f32 %v502_v19 }
 0x79c   :  { %1220 = vtanh.f32 %v475_v22 }
 0x7a5   :  { %v1219_v25 = vpop.eup %1218 }
 0x7a6   :  { %v1221_v27 = vpop.eup %1220  ;;  %505 = vrot.lane.b32.xlu1 %v1219_v25, %s1320_s3 }
 0x7a7   :  { %478 = vrot.lane.b32.xlu0 %v1221_v27, %s1320_s3 }
 0x818   :  { %v506_v28 = vpop.permute.xlu1 %505 }
 0x819   :  { %v508_v29 = vmul.f32 %v506_v28, %v491_v8  ;;  %v479_v30 = vpop.permute.xlu0 %478 }
 0x81a   :  { %v481_v32 = vmul.f32 %v479_v30, %v464_v21 }
 0x81b   :  { %510 = vrot.lane.b32.xlu1 %v508_v29, %s1320_s3 }
 0x81c   :  { %483 = vrot.lane.b32.xlu0 %v481_v32, %s1321_s11 }
 0x88d   :  { %v1528_v34 = vpop.permute.xlu1 %510 }
 0x88e   :  { %v484_v33 = vpop.permute.xlu0 %483 }
 0x88f   :  { %486 = vst.msk [vmem:[#allocation3] sm:$0xff] %vm77_vm1, %v484_v33 }
 0x890   :  { %513 = vst.msk [vmem:[#allocation3] sm:$0xff] %vm406_vm5, %v1528_v34 }
 0x897   :  { %v515_v35 = vld [vmem:[#allocation3] sm:$0xff] }
 0x898   :  { %v516_v36 = vpack.c.bf16 %v515_v35, %v515_v35 }
 0x89a   :  { %1150 = vmatmul.mubr.msk.bf16.vlgmr.msra.gmra.mrb[12].mxu0 %vm163_vm0, %v516_v36 }
 0x89b   :  { %732 = vmatpush1.bf16.msra.mxu0 %v1365_v3  ;;  %763 = vmatprep.mubr.bf16.mxu0 %v1317_v0 }
 0x89c   :  { %733 = vmatprep.subr.bf16.mxu0 %v1368_v4 }
 0x89f   :  { %734 = vmatpush1.bf16.msra.mxu0 %v1370_v5 }
 0x8a0   :  { %735 = vmatprep.subr.bf16.mxu0 %v1377_v7 }
 0x8a3   :  { %736 = vmatpush1.bf16.msra.mxu0 %v1382_v9 }
 0x8a4   :  { %737 = vmatprep.subr.bf16.mxu0 %v1389_v11 }
 0x8a7   :  { %738 = vmatpush1.bf16.msra.mxu0 %v1396_v13 }
 0x8a8   :  { %940 = vmatprep.subr.bf16.mxu0 %v1363_v2 }
 0x96d   :  { %v554_v37 = vpop.f32.mrb[12].mxu0 }
 0x96e   :  { %v555_v38 = vadd.f32 %v554_v37, %v1431_v24  ;;  %v556_v40 = vpop.f32.mrb[13].mxu0 }
 0x96f   :  { %v557_v41 = vadd.f32 %v556_v40, %v1478_v58  ;;  %v558_v42 = vpop.f32.mrb[14].mxu0 }
 0x970   :  { %v562_v43 = vadd.f32 %v1429_v23, %v555_v38  ;;  %v559_v44 = vpop.f32.mrb[15].mxu0 }
 0x971   :  { %v590_v45 = vmul.f32 %v557_v41, %v1440_v31 }
 0x972   :  { %v563_v46 = vmul.f32 %v562_v43, %v1440_v31 }
 0x973   :  { %1222 = vtanh.f32 %v590_v45 }
 0x974   :  { %1224 = vtanh.f32 %v563_v46 }
 0x97d   :  { %v1223_v47 = vpop.eup %1222 }
 0x97e   :  { %v1225_v48 = vpop.eup %1224  ;;  %v592_v49 = vmul.f32 0.5, %v1223_v47 }
 0x97f   :  { %v565_v54 = vmul.f32 0.5, %v1225_v48 }
 0x980   :  { %v593_v55 = vadd.f32 0.5, %v592_v49 }
 0x981   :  { %v566_v56 = vadd.f32 0.5, %v565_v54 }
 0x982   :  { %v594_v57 = vsel %vm1433_vm4, %v1223_v47, %v593_v55 }
 0x983   :  { %597 = vrot.lane.b32.xlu1 %v594_v57, %s1320_s3  ;;  %v567_v23 = vsel %vm1433_vm4, %v1225_v48, %v566_v56  ;;  %v595_v63 = vmul.f32 %v594_v57, %v502_v19 }
 0x984   :  { %570 = vrot.lane.b32.xlu0 %v567_v23, %s1320_s3  ;;  %v568_v6 = vmul.f32 %v567_v23, %v475_v22 }
 0x9f5   :  { %v598_v59 = vpop.permute.xlu1 %597 }
 0x9f6   :  { %v600_v60 = vmul.f32 %v598_v59, %v594_v57  ;;  %v571_v61 = vpop.permute.xlu0 %570 }
 0x9f7   :  { %v573_v62 = vmul.f32 %v571_v61, %v567_v23 }
 0x9f8   :  { %602 = vrot.lane.b32.xlu1 %v600_v60, %s1321_s11 }
 0x9f9   :  { %575 = vrot.lane.b32.xlu0 %v573_v62, %s1321_s11 }
 0xa6a   :  { %v603_v1 = vpop.permute.xlu1 %602 }
 0xa6b   :  { %v605_v8 = vadd.f32 %v603_v1, %v595_v63  ;;  %v576_v21 = vpop.permute.xlu0 %575 }
 0xa6c   :  { %v578_v10 = vadd.f32 %v576_v21, %v568_v6 }
 0xa6d   :  { %1226 = vtanh.f32 %v605_v8 }
 0xa6e   :  { %1228 = vtanh.f32 %v578_v10 }
 0xa77   :  { %v1227_v12 = vpop.eup %1226 }
 0xa78   :  { %v1229_v14 = vpop.eup %1228  ;;  %608 = vrot.lane.b32.xlu1 %v1227_v12, %s1320_s3 }
 0xa79   :  { %581 = vrot.lane.b32.xlu0 %v1229_v14, %s1320_s3 }
 0xaea   :  { %v609_v15 = vpop.permute.xlu1 %608 }
 0xaeb   :  { %v1558_v16 = vmul.f32 %v609_v15, %v594_v57  ;;  %v582_v17 = vpop.permute.xlu0 %581 }
 0xaec   :  { %v584_v18 = vmul.f32 %v582_v17, %v567_v23 }
 0xaed   :  { %613 = vrot.lane.b32.xlu1 %v1558_v16, %s1320_s3 }
 0xaee   :  { %586 = vrot.lane.b32.xlu0 %v584_v18, %s1321_s11 }
 0xb5f   :  { %v614_v20 = vpop.permute.xlu1 %613 }
 0xb60   :  { %v587_v19 = vpop.permute.xlu0 %586 }
 0xb61   :  { %589 = vst.msk [vmem:[#allocation3] sm:$0xff] %vm77_vm1, %v587_v19 }
 0xb62   :  { %616 = vst.msk [vmem:[#allocation3] sm:$0xff] %vm406_vm5, %v614_v20 }
 0xb69   :  { %v622_v22 = vld [vmem:[#allocation3] sm:$0xff] }
 0xb6a   :  { %v623_v25 = vpack.c.bf16 %v622_v22, %v622_v22 }
 0xb6c   :  { %1151 = vmatmul.mubr.msk.bf16.vlgmr.msra.gmra.mrb[8].mxu1 %vm163_vm0, %v623_v25 }
 0xb6d   :  { %838 = vmatpush1.bf16.msra.mxu1 %v1365_v3  ;;  %869 = vmatprep.mubr.bf16.mxu1 %v1317_v0 }
 0xb6e   :  { %839 = vmatprep.subr.bf16.mxu1 %v1368_v4 }
 0xb71   :  { %840 = vmatpush1.bf16.msra.mxu1 %v1370_v5 }
 0xb72   :  { %841 = vmatprep.subr.bf16.mxu1 %v1377_v7 }
 0xb75   :  { %842 = vmatpush1.bf16.msra.mxu1 %v1382_v9 }
 0xb76   :  { %843 = vmatprep.subr.bf16.mxu1 %v1389_v11 }
 0xb79   :  { %844 = vmatpush1.bf16.msra.mxu1 %v1396_v13 }
 0xb7a   :  { %1046 = vmatprep.subr.bf16.mxu1 %v1363_v2 }
 0xc3f   :  { %v661_v27 = vpop.f32.mrb[8].mxu1 }
 0xc40   :  { %v662_v28 = vadd.f32 %v661_v27, %v1431_v24  ;;  %v663_v29 = vpop.f32.mrb[9].mxu1 }
 0xc41   :  { %v664_v30 = vadd.f32 %v663_v29, %v1478_v58  ;;  %v665_v32 = vpop.f32.mrb[10].mxu1 }
 0xc42   :  { %v669_v33 = vadd.f32 %v662_v28, %v1460_v51  ;;  %v666_v35 = vpop.f32.mrb[11].mxu1 }
 0xc43   :  { %v697_v36 = vmul.f32 %v664_v30, %v1440_v31 }
 0xc44   :  { %v670_v37 = vmul.f32 %v669_v33, %v1440_v31 }
 0xc45   :  { %1230 = vtanh.f32 %v697_v36 }
 0xc46   :  { %1232 = vtanh.f32 %v670_v37 }
 0xc4f   :  { %v1231_v38 = vpop.eup %1230 }
 0xc50   :  { %v1233_v40 = vpop.eup %1232  ;;  %v699_v41 = vmul.f32 0.5, %v1231_v38 }
 0xc51   :  { %v672_v2 = vmul.f32 0.5, %v1233_v40 }
 0xc52   :  { %v700_v42 = vadd.f32 0.5, %v699_v41 }
 0xc53   :  { %v673_v43 = vadd.f32 0.5, %v672_v2 }
 0xc54   :  { %v701_v44 = vsel %vm1433_vm4, %v1231_v38, %v700_v42 }
 0xc55   :  { %704 = vrot.lane.b32.xlu1 %v701_v44, %s1320_s3  ;;  %v674_v51 = vsel %vm1433_vm4, %v1233_v40, %v673_v43  ;;  %v702_v49 = vmul.f32 %v701_v44, %v605_v8 }
 0xc56   :  { %677 = vrot.lane.b32.xlu0 %v674_v51, %s1320_s3  ;;  %v675_v55 = vmul.f32 %v674_v51, %v578_v10 }
 0xcc7   :  { %v705_v45 = vpop.permute.xlu1 %704 }
 0xcc8   :  { %v707_v46 = vmul.f32 %v705_v45, %v701_v44  ;;  %v678_v47 = vpop.permute.xlu0 %677 }
 0xcc9   :  { %v680_v48 = vmul.f32 %v678_v47, %v674_v51 }
 0xcca   :  { %709 = vrot.lane.b32.xlu1 %v707_v46, %s1321_s11 }
 0xccb   :  { %682 = vrot.lane.b32.xlu0 %v680_v48, %s1321_s11 }
 0xd3c   :  { %v710_v54 = vpop.permute.xlu1 %709 }
 0xd3d   :  { %v712_v56 = vadd.f32 %v710_v54, %v702_v49  ;;  %v683_v57 = vpop.permute.xlu0 %682 }
 0xd3e   :  { %v685_v23 = vadd.f32 %v683_v57, %v675_v55 }
 0xd3f   :  { %1234 = vtanh.f32 %v712_v56 }
 0xd40   :  { %1236 = vtanh.f32 %v685_v23 }
 0xd49   :  { %v1235_v59 = vpop.eup %1234 }
 0xd4a   :  { %v1237_v60 = vpop.eup %1236  ;;  %715 = vrot.lane.b32.xlu1 %v1235_v59, %s1320_s3 }
 0xd4b   :  { %688 = vrot.lane.b32.xlu0 %v1237_v60, %s1320_s3 }
 0xdbc   :  { %v716_v61 = vpop.permute.xlu1 %715 }
 0xdbd   :  { %v1590_v62 = vmul.f32 %v716_v61, %v701_v44  ;;  %v689_v63 = vpop.permute.xlu0 %688 }
 0xdbe   :  { %v691_v1 = vmul.f32 %v689_v63, %v674_v51 }
 0xdbf   :  { %720 = vrot.lane.b32.xlu1 %v1590_v62, %s1320_s3 }
 0xdc0   :  { %693 = vrot.lane.b32.xlu0 %v691_v1, %s1321_s11 }
 0xe31   :  { %v721_v8 = vpop.permute.xlu1 %720 }
 0xe32   :  { %v694_v6 = vpop.permute.xlu0 %693 }
 0xe33   :  { %696 = vst.msk [vmem:[#allocation3] sm:$0xff] %vm77_vm1, %v694_v6 }
 0xe34   :  { %723 = vst.msk [vmem:[#allocation3] sm:$0xff] %vm406_vm5, %v721_v8 }
 0xe3b   :  { %v726_v21 = vld [vmem:[#allocation3] sm:$0xff] }
 0xe3c   :  { %v727_v10 = vpack.c.bf16 %v726_v21, %v726_v21 }
 0xe3e   :  { %1152 = vmatmul.mubr.msk.bf16.vlgmr.msra.gmra.mrb[16].mxu0 %vm163_vm0, %v727_v10 }
 0xe3f   :  { %941 = vmatpush1.bf16.msra.mxu0 %v1365_v3  ;;  %972 = vmatprep.mubr.bf16.mxu0 %v1317_v0 }
 0xe40   :  { %942 = vmatprep.subr.bf16.mxu0 %v1368_v4 }
 0xe43   :  { %943 = vmatpush1.bf16.msra.mxu0 %v1370_v5 }
 0xe44   :  { %944 = vmatprep.subr.bf16.mxu0 %v1377_v7 }
 0xe47   :  { %945 = vmatpush1.bf16.msra.mxu0 %v1382_v9 }
 0xe48   :  { %946 = vmatprep.subr.bf16.mxu0 %v1389_v11 }
 0xe4b   :  { %947 = vmatpush1.bf16.msra.mxu0 %v1396_v13 }
 0xf11   :  { %v765_v12 = vpop.f32.mrb[16].mxu0 }
 0xf12   :  { %v766_v14 = vadd.f32 %v765_v12, %v1431_v24  ;;  %v767_v15 = vpop.f32.mrb[17].mxu0 }
 0xf13   :  { %v768_v17 = vadd.f32 %v767_v15, %v1478_v58  ;;  %v769_v18 = vpop.f32.mrb[18].mxu0 }
 0xf14   :  { %v773_v19 = vadd.f32 %v766_v14, %v1464_v53  ;;  %v770_v20 = vpop.f32.mrb[19].mxu0 }
 0xf15   :  { %v801_v22 = vmul.f32 %v768_v17, %v1440_v31 }
 0xf16   :  { %v774_v25 = vmul.f32 %v773_v19, %v1440_v31 }
 0xf17   :  { %1238 = vtanh.f32 %v801_v22 }
 0xf18   :  { %1240 = vtanh.f32 %v774_v25 }
 0xf21   :  { %v1239_v27 = vpop.eup %1238 }
 0xf22   :  { %v1241_v28 = vpop.eup %1240  ;;  %v803_v29 = vmul.f32 0.5, %v1239_v27 }
 0xf23   :  { %v776_v30 = vmul.f32 0.5, %v1241_v28 }
 0xf24   :  { %v804_v32 = vadd.f32 0.5, %v803_v29 }
 0xf25   :  { %v777_v33 = vadd.f32 0.5, %v776_v30 }
 0xf26   :  { %v805_v35 = vsel %vm1433_vm4, %v1239_v27, %v804_v32 }
 0xf27   :  { %808 = vrot.lane.b32.xlu1 %v805_v35, %s1320_s3  ;;  %v778_v53 = vsel %vm1433_vm4, %v1241_v28, %v777_v33  ;;  %v806_v41 = vmul.f32 %v805_v35, %v712_v56 }
 0xf28   :  { %781 = vrot.lane.b32.xlu0 %v778_v53, %s1320_s3  ;;  %v779_v42 = vmul.f32 %v778_v53, %v685_v23 }
 0xf99   :  { %v809_v36 = vpop.permute.xlu1 %808 }
 0xf9a   :  { %v811_v37 = vmul.f32 %v809_v36, %v805_v35  ;;  %v782_v38 = vpop.permute.xlu0 %781 }
 0xf9b   :  { %v784_v40 = vmul.f32 %v782_v38, %v778_v53 }
 0xf9c   :  { %813 = vrot.lane.b32.xlu1 %v811_v37, %s1321_s11 }
 0xf9d   :  { %786 = vrot.lane.b32.xlu0 %v784_v40, %s1321_s11 }
0x100e   :  { %v814_v2 = vpop.permute.xlu1 %813 }
0x100f   :  { %v816_v43 = vadd.f32 %v814_v2, %v806_v41  ;;  %v787_v44 = vpop.permute.xlu0 %786 }
0x1010   :  { %v789_v51 = vadd.f32 %v787_v44, %v779_v42 }
0x1011   :  { %1242 = vtanh.f32 %v816_v43 }
0x1012   :  { %1244 = vtanh.f32 %v789_v51 }
0x101b   :  { %v1243_v45 = vpop.eup %1242 }
0x101c   :  { %v1245_v46 = vpop.eup %1244  ;;  %819 = vrot.lane.b32.xlu1 %v1243_v45, %s1320_s3 }
0x101d   :  { %792 = vrot.lane.b32.xlu0 %v1245_v46, %s1320_s3 }
0x108e   :  { %v820_v47 = vpop.permute.xlu1 %819 }
0x108f   :  { %v1621_v48 = vmul.f32 %v820_v47, %v805_v35  ;;  %v793_v49 = vpop.permute.xlu0 %792 }
0x1090   :  { %v795_v54 = vmul.f32 %v793_v49, %v778_v53 }
0x1091   :  { %824 = vrot.lane.b32.xlu1 %v1621_v48, %s1320_s3 }
0x1092   :  { %797 = vrot.lane.b32.xlu0 %v795_v54, %s1321_s11 }
0x1103   :  { %v825_v56 = vpop.permute.xlu1 %824 }
0x1104   :  { %v798_v55 = vpop.permute.xlu0 %797 }
0x1105   :  { %800 = vst.msk [vmem:[#allocation3] sm:$0xff] %vm77_vm1, %v798_v55 }
0x1106   :  { %827 = vst.msk [vmem:[#allocation3] sm:$0xff] %vm406_vm5, %v825_v56 }
0x110d   :  { %v832_v57 = vld [vmem:[#allocation3] sm:$0xff] }
0x110e   :  { %v833_v23 = vpack.c.bf16 %v832_v57, %v832_v57 }
0x1110   :  { %1153 = vmatmul.mubr.msk.bf16.vlgmr.msra.gmra.mrb[12].mxu1 %vm163_vm0, %v833_v23 }
0x1111   :  { %1047 = vmatpush1.bf16.msra.mxu1 %v1365_v3  ;;  %1078 = vmatprep.mubr.bf16.mxu1 %v1317_v0 }
0x1112   :  { %1048 = vmatprep.subr.bf16.mxu1 %v1368_v4 }
0x1115   :  { %1049 = vmatpush1.bf16.msra.mxu1 %v1370_v5 }
0x1116   :  { %1050 = vmatprep.subr.bf16.mxu1 %v1377_v7 }
0x1119   :  { %1051 = vmatpush1.bf16.msra.mxu1 %v1382_v9 }
0x111a   :  { %1052 = vmatprep.subr.bf16.mxu1 %v1389_v11 }
0x111d   :  { %1053 = vmatpush1.bf16.msra.mxu1 %v1396_v13 }
0x11e3   :  { %v871_v59 = vpop.f32.mrb[12].mxu1 }
0x11e4   :  { %v872_v60 = vadd.f32 %v871_v59, %v1431_v24  ;;  %v873_v61 = vpop.f32.mrb[13].mxu1 }
0x11e5   :  { %v874_v3 = vadd.f32 %v873_v61, %v1478_v58  ;;  %v875_v63 = vpop.f32.mrb[14].mxu1 }
0x11e6   :  { %v879_v0 = vadd.f32 %v1458_v50, %v872_v60  ;;  %v876_v4 = vpop.f32.mrb[15].mxu1 }
0x11e7   :  { %v907_v5 = vmul.f32 %v874_v3, %v1440_v31 }
0x11e8   :  { %v880_v7 = vmul.f32 %v879_v0, %v1440_v31 }
0x11e9   :  { %1246 = vtanh.f32 %v907_v5 }
0x11ea   :  { %1248 = vtanh.f32 %v880_v7 }
0x11f3   :  { %v1247_v9 = vpop.eup %1246 }
0x11f4   :  { %v1249_v11 = vpop.eup %1248  ;;  %v909_v1 = vmul.f32 0.5, %v1247_v9 }
0x11f5   :  { %v882_v13 = vmul.f32 0.5, %v1249_v11 }
0x11f6   :  { %v910_v6 = vadd.f32 0.5, %v909_v1 }
0x11f7   :  { %v883_v8 = vadd.f32 0.5, %v882_v13 }
0x11f8   :  { %v911_v21 = vsel %vm1433_vm4, %v1247_v9, %v910_v6 }
0x11f9   :  { %914 = vrot.lane.b32.xlu1 %v911_v21, %s1320_s3  ;;  %v884_v50 = vsel %vm1433_vm4, %v1249_v11, %v883_v8  ;;  %v912_v17 = vmul.f32 %v911_v21, %v816_v43 }
0x11fa   :  { %887 = vrot.lane.b32.xlu0 %v884_v50, %s1320_s3  ;;  %v885_v19 = vmul.f32 %v884_v50, %v789_v51 }
0x126b   :  { %v915_v10 = vpop.permute.xlu1 %914 }
0x126c   :  { %v917_v12 = vmul.f32 %v915_v10, %v911_v21  ;;  %v888_v14 = vpop.permute.xlu0 %887 }
0x126d   :  { %v890_v15 = vmul.f32 %v888_v14, %v884_v50 }
0x126e   :  { %919 = vrot.lane.b32.xlu1 %v917_v12, %s1321_s11 }
0x126f   :  { %892 = vrot.lane.b32.xlu0 %v890_v15, %s1321_s11 }
0x12e0   :  { %v920_v18 = vpop.permute.xlu1 %919 }
0x12e1   :  { %v922_v20 = vadd.f32 %v920_v18, %v912_v17  ;;  %v893_v22 = vpop.permute.xlu0 %892 }
0x12e2   :  { %v895_v25 = vadd.f32 %v893_v22, %v885_v19 }
0x12e3   :  { %1250 = vtanh.f32 %v922_v20 }
0x12e4   :  { %1252 = vtanh.f32 %v895_v25 }
0x12ed   :  { %v1251_v27 = vpop.eup %1250 }
0x12ee   :  { %v1253_v28 = vpop.eup %1252  ;;  %925 = vrot.lane.b32.xlu1 %v1251_v27, %s1320_s3 }
0x12ef   :  { %898 = vrot.lane.b32.xlu0 %v1253_v28, %s1320_s3 }
0x1360   :  { %v926_v29 = vpop.permute.xlu1 %925 }
0x1361   :  { %v928_v30 = vmul.f32 %v926_v29, %v911_v21  ;;  %v899_v32 = vpop.permute.xlu0 %898 }
0x1362   :  { %v901_v33 = vmul.f32 %v899_v32, %v884_v50 }
0x1363   :  { %930 = vrot.lane.b32.xlu1 %v928_v30, %s1320_s3 }
0x1364   :  { %903 = vrot.lane.b32.xlu0 %v901_v33, %s1321_s11 }
0x13d5   :  { %v1654_v53 = vpop.permute.xlu1 %930 }
0x13d6   :  { %v904_v35 = vpop.permute.xlu0 %903 }
0x13d7   :  { %906 = vst.msk [vmem:[#allocation3] sm:$0xff] %vm77_vm1, %v904_v35 }
0x13d8   :  { %933 = vst.msk [vmem:[#allocation3] sm:$0xff] %vm406_vm5, %v1654_v53 }
0x13df   :  { %v935_v36 = vld [vmem:[#allocation3] sm:$0xff] }
0x13e0   :  { %v936_v37 = vpack.c.bf16 %v935_v36, %v935_v36 }
0x13e2   :  { %1154 = vmatmul.mubr.msk.bf16.vlgmr.msra.gmra.mrb[20].mxu0 %vm163_vm0, %v936_v37 }
0x14b5   :  { %v974_v38 = vpop.f32.mrb[20].mxu0 }
0x14b6   :  { %v975_v40 = vadd.f32 %v974_v38, %v1431_v24  ;;  %v976_v41 = vpop.f32.mrb[21].mxu0 }
0x14b7   :  { %v977_v2 = vadd.f32 %v976_v41, %v1478_v58  ;;  %v978_v42 = vpop.f32.mrb[22].mxu0 }
0x14b8   :  { %v982_v43 = vadd.f32 %v1462_v52, %v975_v40  ;;  %v979_v44 = vpop.f32.mrb[23].mxu0 }
0x14b9   :  { %v1010_v51 = vmul.f32 %v977_v2, %v1440_v31 }
0x14ba   :  { %v983_v45 = vmul.f32 %v982_v43, %v1440_v31 }
0x14bb   :  { %1254 = vtanh.f32 %v1010_v51 }
0x14bc   :  { %1256 = vtanh.f32 %v983_v45 }
0x14c5   :  { %v1255_v46 = vpop.eup %1254 }
0x14c6   :  { %v1257_v47 = vpop.eup %1256  ;;  %v1012_v49 = vmul.f32 0.5, %v1255_v46 }
0x14c7   :  { %v985_v54 = vmul.f32 0.5, %v1257_v47 }
0x14c8   :  { %v1013_v55 = vadd.f32 0.5, %v1012_v49 }
0x14c9   :  { %v986_v56 = vadd.f32 0.5, %v985_v54 }
0x14ca   :  { %v1014_v24 = vsel %vm1433_vm4, %v1255_v46, %v1013_v55 }
0x14cb   :  { %1017 = vrot.lane.b32.xlu1 %v1014_v24, %s1320_s3  ;;  %v987_v52 = vsel %vm1433_vm4, %v1257_v47, %v986_v56  ;;  %v1015_v61 = vmul.f32 %v1014_v24, %v922_v20 }
0x14cc   :  { %990 = vrot.lane.b32.xlu0 %v987_v52, %s1320_s3  ;;  %v988_v63 = vmul.f32 %v987_v52, %v895_v25 }
0x153d   :  { %v1018_v57 = vpop.permute.xlu1 %1017 }
0x153e   :  { %v1020_v23 = vmul.f32 %v1018_v57, %v1014_v24  ;;  %v991_v59 = vpop.permute.xlu0 %990 }
0x153f   :  { %v993_v60 = vmul.f32 %v991_v59, %v987_v52 }
0x1540   :  { %1022 = vrot.lane.b32.xlu1 %v1020_v23, %s1321_s11 }
0x1541   :  { %995 = vrot.lane.b32.xlu0 %v993_v60, %s1321_s11 }
0x15b2   :  { %v1023_v3 = vpop.permute.xlu1 %1022 }
0x15b3   :  { %v1025_v0 = vadd.f32 %v1023_v3, %v1015_v61  ;;  %v996_v4 = vpop.permute.xlu0 %995 }
0x15b4   :  { %v998_v5 = vadd.f32 %v996_v4, %v988_v63 }
0x15b5   :  { %1258 = vtanh.f32 %v1025_v0 }
0x15b6   :  { %1260 = vtanh.f32 %v998_v5 }
0x15bf   :  { %v1259_v7 = vpop.eup %1258 }
0x15c0   :  { %v1261_v9 = vpop.eup %1260  ;;  %1028 = vrot.lane.b32.xlu1 %v1259_v7, %s1320_s3 }
0x15c1   :  { %1001 = vrot.lane.b32.xlu0 %v1261_v9, %s1320_s3 }
0x1632   :  { %v1029_v11 = vpop.permute.xlu1 %1028 }
0x1633   :  { %v1031_v1 = vmul.f32 %v1029_v11, %v1014_v24  ;;  %v1002_v13 = vpop.permute.xlu0 %1001 }
0x1634   :  { %v1004_v6 = vmul.f32 %v1002_v13, %v987_v52 }
0x1635   :  { %1033 = vrot.lane.b32.xlu1 %v1031_v1, %s1320_s3 }
0x1636   :  { %1006 = vrot.lane.b32.xlu0 %v1004_v6, %s1321_s11 }
0x16a7   :  { %v1034_v21 = vpop.permute.xlu1 %1033 }
0x16a8   :  { %v1007_v8 = vpop.permute.xlu0 %1006 }
0x16a9   :  { %1009 = vst.msk [vmem:[#allocation3] sm:$0xff] %vm77_vm1, %v1007_v8 }
0x16aa   :  { %1036 = vst.msk [vmem:[#allocation3] sm:$0xff] %vm406_vm5, %v1034_v21 }
0x16b1   :  { %v1041_v50 = vld [vmem:[#allocation3] sm:$0xff] }
0x16b2   :  { %v1042_v10 = vpack.c.bf16 %v1041_v50, %v1041_v50 }
0x16b4   :  { %1155 = vmatmul.mubr.msk.bf16.vlgmr.msra.gmra.mrb[16].mxu1 %vm163_vm0, %v1042_v10 }
0x1787   :  { %v1080_v12 = vpop.f32.mrb[16].mxu1 }
0x1788   :  { %v1081_v14 = vpop.f32.mrb[17].mxu1 }
0x1789   :  { %v1082_v15 = vadd.f32 %v1081_v14, %v1478_v58  ;;  %v1083_v17 = vpop.f32.mrb[18].mxu1 }
0x178a   :  { %v1084_v18 = vpop.f32.mrb[19].mxu1 }
0x178b   :  { %v1086_v19 = vmul.f32 %v1082_v15, %v1440_v31 }
0x178d   :  { %1262 = vtanh.f32 %v1086_v19 }
0x1797   :  { %v1263_v20 = vpop.eup %1262 }
0x1798   :  { %v1088_v22 = vmul.f32 0.5, %v1263_v20 }
0x179a   :  { %v1089_v25 = vadd.f32 0.5, %v1088_v22 }
0x179c   :  { %v1090_v27 = vsel %vm1433_vm4, %v1263_v20, %v1089_v25 }
0x179d   :  { %1093 = vrot.lane.b32.xlu0 %v1090_v27, %s1320_s3  ;;  %v1091_v31 = vmul.f32 %v1090_v27, %v1025_v0 }
0x180f   :  { %v1094_v28 = vpop.permute.xlu0 %1093 }
0x1810   :  { %v1096_v29 = vmul.f32 %v1094_v28, %v1090_v27 }
0x1812   :  { %1098 = vrot.lane.b32.xlu1 %v1096_v29, %s1321_s11 }
0x1816   :  { %408 = vrot.lane.b32.xlu1 %v1494_v39, %s1321_s11 }
0x181a   :  { %617 = vrot.lane.b32.xlu1 %v1558_v16, %s1322_s0 }
0x1884   :  { %v1099_v58 = vpop.permute.xlu1 %1098 }
0x1885   :  { %v1101_v30 = vadd.f32 %v1099_v58, %v1091_v31 }
0x1887   :  { %1264 = vtanh.f32 %v1101_v30 }
0x1888   :  { %v409_v32 = vpop.permute.xlu1 %408 }
0x1889   :  { %411 = vst.msk [vmem:[#allocation7] sm:$0xff] %vm77_vm1, %v409_v32 }
0x188a   :  { %514 = vst.msk [vmem:[#allocation7] sm:$0xff] %vm406_vm5, %v1528_v34 }
0x188c   :  { %v618_v26 = vpop.permute.xlu1 %617 }
0x188d   :  { %621 = vst.msk [vmem:[#allocation7] sm:$0xff] %vm620_vm6, %v618_v26 }
0x188e   :  { %725 = vst.msk [vmem:[#allocation7] sm:$0xff] %vm724_vm7, %v1590_v62 }
0x1891   :  { %v1265_v39 = vpop.eup %1264 }
0x1892   :  { %1104 = vrot.lane.b32.xlu0 %v1265_v39, %s1320_s3 }
0x1896   :  { %828 = vrot.lane.b32.xlu0 %v1621_v48, %s1321_s11 }
0x189a   :  { %1037 = vrot.lane.b32.xlu0 %v1031_v1, %s1322_s0 }
0x1904   :  { %v1105_v16 = vpop.permute.xlu0 %1104 }
0x1905   :  { %v1107_v33 = vmul.f32 %v1105_v16, %v1090_v27 }
0x1907   :  { %1109 = vrot.lane.b32.xlu1 %v1107_v33, %s1320_s3 }
0x1908   :  { %v829_v34 = vpop.permute.xlu0 %828 }
0x1909   :  { %831 = vst.msk [vmem:[#allocation7 + $0x8] sm:$0xff] %vm77_vm1, %v829_v34 }
0x190a   :  { %934 = vst.msk [vmem:[#allocation7 + $0x8] sm:$0xff] %vm406_vm5, %v1654_v53 }
0x190c   :  { %v1038_v62 = vpop.permute.xlu0 %1037 }
0x190d   :  { %1040 = vst.msk [vmem:[#allocation7 + $0x8] sm:$0xff] %vm620_vm6, %v1038_v62 }
0x190e   :  { %1113 = vst.msk [vmem:[#allocation7 + $0x8] sm:$0xff] %vm724_vm7, %v1107_v33 }
0x190f   :  { %1299 = shalt.err (!%p1296_p12)
}
0x1910   :  { %s1300_s21 = scalar_lea.hbm %s1721_s4, 256 }
0x1911   :  { %p1301_p13 = scmp.ne.s32.totalorder %s1721_s4, %s1300_s21  ;;  %p1304_p0 = scmp.lt.u32.totalorder %s1300_s21, %s1721_s4 }
0x1913   :  { %p1306_p1 = pnand %p1304_p0, %p1301_p13 }
0x1915   :  { %1309 = shalt.err (!%p1306_p1)
}
0x1916   :  { %1123 = dma.vmem_to_hbm [thread:$0]  %s1121_s17, 256, %s1721_s4, [#allocation6]  }
0x1979   :  { %v1110_v48 = vpop.permute.xlu1 %1109 }
0x197a   :  { %1112 = vst.msk [vmem:[#allocation3] sm:$0xff] %vm406_vm5, %v1110_v48 }
0x197b   :  { %1312 = dma.done.wait [#allocation6], 256  }
0x197c   :  { %1313 = vsyncadd [#allocation6], 4294967040 }
0x197d   :  { %1127 = vsyncpa [#allocation5], 1 }
0x197e   :  { %1128 = vsyncpa [#allocation6], 1 }

</bundles_post_ra>
